<compile_context>
chip_gen: v7x
topology: tpu7x:2x2x1
jax: 0.10.0
libtpu: 0.0.40
codegen_flags: <defaults>
</compile_context>

<pallas_src>
import functools

import numpy as np
import jax
import jax.numpy as jnp
from jax.experimental import pallas as pl
from jax.experimental.pallas import tpu as pltpu


# ----------------------------------------------------------------------------
# Fused kernel: upsample + pad + (concat-free) DoubleConv, channels-major
# ----------------------------------------------------------------------------

def _up_fused_kernel(ut_ref, mask_ref, x1_ref, x2_ref,
                     w1_ref, s1_ref, b1_ref, w2_ref, s2_ref, b2_ref,
                     out_ref,
                     x2pad_ref, uppad_ref, midpad_ref, slab1_ref, slab2_ref,
                     *, width):
    """One batch element per grid step (all tensors channels-major).

    ut_ref   : (H1*W1, H2*W2) bf16   upsample(+F.pad) operator
    mask_ref : (9, H2*W2)     f32    per-tap validity mask (0/1)
    x1_ref   : (1, C1, H1*W1) bf16   deep feature map (flattened NCHW)
    x2_ref   : (1, C2, H2*W2) bf16   skip connection (flattened NCHW)
    w1_ref   : (Cmid, 9*(C2+C1)) bf16  conv1 weight, taps packed (dy,dx,ci)
    w2_ref   : (Cout, 9*Cmid)    bf16  conv2 weight, taps packed (dy,dx,ci)
    s*/b*    : (C, 1) f32            folded BatchNorm scale / bias
    out_ref  : (1, Cout, H2*W2) bf16
    scratch  : x2pad/uppad/midpad (C, HW + 2*PADC) bf16 flat buffers with a
               lane halo; slab1 (9*(C1+C2), HW) / slab2 (9*Cmid, HW) bf16.
    """
    C2 = x2pad_ref.shape[0]
    C1 = uppad_ref.shape[0]
    Cmid = midpad_ref.shape[0]
    Cout, HW = out_ref.shape[1], out_ref.shape[2]
    Ctot = C1 + C2
    PADC = (x2pad_ref.shape[1] - HW) // 2

    # ---- stage the skip connection in its flat channels-major buffer --------
    x2pad_ref[:, PADC:PADC + HW] = x2_ref[0]

    # ---- bilinear upsample (align_corners=True) + F.pad as ONE matmul -------
    # (C1, H1*W1) @ (H1*W1, H2*W2), bf16 in / f32 accumulate on the MXU.
    up = jax.lax.dot_general(
        x1_ref[0], ut_ref[...],
        dimension_numbers=(((1,), (0,)), ((), ())),
        preferred_element_type=jnp.float32)
    uppad_ref[:, PADC:PADC + HW] = up.astype(uppad_ref.dtype)

    def tap(src_ref, dy, dx):
        # Constant-offset lane slice == spatial shift by (dy-1, dx-1).
        # Taps that fall outside the image are zeroed with the precomputed
        # mask (jnp.where, so uninitialised halo contents can never leak).
        start = PADC + (dy - 1) * width + (dx - 1)
        blk = src_ref[:, start:start + HW]
        t = dy * 3 + dx
        if t != 4:                                   # centre tap is always valid
            blk = jnp.where(mask_ref[t:t + 1, :] > 0.0, blk, 0)
        return blk

    # ---- conv1: im2col slab over the *virtual* concat [x2, up(x1)] ----------
    for dy in range(3):
        for dx in range(3):
            r0 = (dy * 3 + dx) * Ctot
            slab1_ref[r0:r0 + C2, :] = tap(x2pad_ref, dy, dx)       # x2 first
            slab1_ref[r0 + C2:r0 + Ctot, :] = tap(uppad_ref, dy, dx)  # then x1

    mid = jax.lax.dot_general(                       # (Cmid, 9*Ctot) x (9*Ctot, HW)
        w1_ref[...], slab1_ref[...],
        dimension_numbers=(((1,), (0,)), ((), ())),
        preferred_element_type=jnp.float32)
    mid = jnp.maximum(mid * s1_ref[...] + b1_ref[...], 0.0)         # BN + ReLU
    midpad_ref[:, PADC:PADC + HW] = mid.astype(midpad_ref.dtype)

    # ---- conv2: im2col slab over mid -----------------------------------------
    for dy in range(3):
        for dx in range(3):
            r0 = (dy * 3 + dx) * Cmid
            slab2_ref[r0:r0 + Cmid, :] = tap(midpad_ref, dy, dx)

    out = jax.lax.dot_general(                       # (Cout, 9*Cmid) x (9*Cmid, HW)
        w2_ref[...], slab2_ref[...],
        dimension_numbers=(((1,), (0,)), ((), ())),
        preferred_element_type=jnp.float32)
    out = jnp.maximum(out * s2_ref[...] + b2_ref[...], 0.0)         # BN + ReLU
    out_ref[0] = out.astype(out_ref.dtype)           # single lane-dense bf16 store


# ----------------------------------------------------------------------------
# Host-side static operators (functions of shapes only)
# ----------------------------------------------------------------------------

def _bilinear_up2_matrix(in_size):
    """(2*in, in) matrix of nn.Upsample(scale=2, bilinear, align_corners=True)."""
    out_size = 2 * in_size
    A = np.zeros((out_size, in_size), np.float32)
    if in_size == 1:
        A[:, 0] = 1.0
    else:
        for i in range(out_size):
            pos = i * (in_size - 1) / (out_size - 1)          # align_corners=True
            i0 = int(np.floor(pos))
            frac = pos - i0
            i1 = min(i0 + 1, in_size - 1)
            A[i, i0] += 1.0 - frac
            A[i, i1] += frac
    return A


def _upsample_pad_operator(H1, W1, H2, W2):
    """UT[h*W1+w, o*W2+p] so that up_padded[c, o*W2+p] = sum_k x1[c, k] * UT[k, .]."""
    dy, dx = H2 - 2 * H1, W2 - 2 * W1
    assert dy >= 0 and dx >= 0, "negative F.pad (crop) not supported"
    Ah = np.zeros((H2, H1), np.float32)
    Aw = np.zeros((W2, W1), np.float32)
    Ah[dy // 2: dy // 2 + 2 * H1, :] = _bilinear_up2_matrix(H1)
    Aw[dx // 2: dx // 2 + 2 * W1, :] = _bilinear_up2_matrix(W1)
    UT = np.einsum("oh,pw->hwop", Ah, Aw).reshape(H1 * W1, H2 * W2)
    return jnp.asarray(UT)


def _tap_masks(H2, W2):
    """(9, H2*W2) 0/1 mask: tap (dy,dx) valid iff source pixel is inside the image."""
    p = np.arange(H2 * W2)
    y, x = p // W2, p % W2
    m = np.zeros((9, H2 * W2), np.float32)
    for dy in range(3):
        for dx in range(3):
            yy, xx = y + dy - 1, x + dx - 1
            m[dy * 3 + dx] = ((yy >= 0) & (yy < H2) & (xx >= 0) & (xx < W2))
    return jnp.asarray(m)


# ----------------------------------------------------------------------------
# Wrapper (module boundary: NCHW in / NCHW out — reshapes only, no transposes)
# ----------------------------------------------------------------------------

def up_forward(x1_nchw, x2_nchw, params):
    N, C1, H1, W1 = x1_nchw.shape
    N2, C2, H2, W2 = x2_nchw.shape
    assert N == N2
    HW, H1W1 = H2 * W2, H1 * W1
    Cmid, Cout = params["w1"].shape[0], params["w2"].shape[0]
    Ctot = C1 + C2
    assert params["w1"].shape[1] == 9 * Ctot and params["w2"].shape[1] == 9 * Cmid

    # Lane halo around the flat spatial axis; keep interior writes lane aligned.
    PADC = max(128, -(-(W2 + 1) // 128) * 128)
    PADTOT = HW + 2 * PADC

    ut = _upsample_pad_operator(H1, W1, H2, W2).astype(jnp.bfloat16)   # (H1W1, HW)
    masks = _tap_masks(H2, W2)                                         # (9, HW) f32

    x1f = x1_nchw.reshape(N, C1, H1W1).astype(jnp.bfloat16)            # free reshape
    x2f = x2_nchw.reshape(N, C2, HW).astype(jnp.bfloat16)              # free reshape
    bf = lambda a: a.astype(jnp.bfloat16)

    flops = 2 * N * HW * (C1 * H1W1 + Cmid * 9 * Ctot + Cout * 9 * Cmid)
    bytes_accessed = int(
        x1f.size * 2 + x2f.size * 2 + ut.size * 2 + masks.size * 4
        + (params["w1"].size + params["w2"].size) * 2
        + (params["s1"].size + params["b1"].size
           + params["s2"].size + params["b2"].size) * 4
        + N * Cout * HW * 2)

    out = pl.pallas_call(
        functools.partial(_up_fused_kernel, width=W2),
        out_shape=jax.ShapeDtypeStruct((N, Cout, HW), jnp.bfloat16),
        grid=(N,),
        in_specs=[
            pl.BlockSpec((H1W1, HW), lambda n: (0, 0)),            # upsample op
            pl.BlockSpec((9, HW), lambda n: (0, 0)),               # tap masks
            pl.BlockSpec((1, C1, H1W1), lambda n: (n, 0, 0)),      # x1 (flat NCHW)
            pl.BlockSpec((1, C2, HW), lambda n: (n, 0, 0)),        # x2 (flat NCHW)
            pl.BlockSpec((Cmid, 9 * Ctot), lambda n: (0, 0)),      # conv1 weight
            pl.BlockSpec((Cmid, 1), lambda n: (0, 0)),             # bn1 scale
            pl.BlockSpec((Cmid, 1), lambda n: (0, 0)),             # bn1 bias
            pl.BlockSpec((Cout, 9 * Cmid), lambda n: (0, 0)),      # conv2 weight
            pl.BlockSpec((Cout, 1), lambda n: (0, 0)),             # bn2 scale
            pl.BlockSpec((Cout, 1), lambda n: (0, 0)),             # bn2 bias
        ],
        out_specs=pl.BlockSpec((1, Cout, HW), lambda n: (n, 0, 0)),
        scratch_shapes=[
            pltpu.VMEM((C2, PADTOT), jnp.bfloat16),        # x2, flat + halo
            pltpu.VMEM((C1, PADTOT), jnp.bfloat16),        # upsampled x1, flat + halo
            pltpu.VMEM((Cmid, PADTOT), jnp.bfloat16),      # mid activations
            pltpu.VMEM((9 * Ctot, HW), jnp.bfloat16),      # conv1 im2col slab (K=9*Ctot)
            pltpu.VMEM((9 * Cmid, HW), jnp.bfloat16),      # conv2 im2col slab (K=9*Cmid)
        ],
        compiler_params=pltpu.CompilerParams(
            dimension_semantics=("parallel",),             # batch splits across v7x TCs
            vmem_limit_bytes=32 * 1024 * 1024),
        cost_estimate=pl.CostEstimate(flops=flops, transcendentals=0,
                                      bytes_accessed=bytes_accessed),
    )(ut, masks, x1f, x2f,
      bf(params["w1"]), params["s1"], params["b1"],
      bf(params["w2"]), params["s2"], params["b2"])

    return out.reshape(N, Cout, H2, W2)                    # free reshape, stays NCHW


# ----------------------------------------------------------------------------
# Parameter construction (deterministic, synthetic)
# ----------------------------------------------------------------------------

_BN_EPS = 1e-5


def _bn_fold(kg, kb, c):
    # Fresh BatchNorm2d, eval mode: running_mean=0, running_var=1.
    # TODO(synk): for real checkpoints fold scale=gamma/sqrt(var+eps),
    #             bias=beta-mean*scale; training-mode batch stats not modeled.
    gamma = 1.0 + 0.1 * jax.random.normal(kg, (c,), jnp.float32)
    beta = 0.1 * jax.random.normal(kb, (c,), jnp.float32)
    scale = gamma / jnp.sqrt(jnp.float32(1.0 + _BN_EPS))
    return scale.reshape(c, 1), beta.reshape(c, 1)


def init_up_params(key, in_channels, out_channels, bilinear=True):
    """Up(in_channels, out_channels, bilinear=True) parameters.

    Conv weights are generated in PyTorch (Cout, Cin, 3, 3) layout and packed
    to (Cout, 9*Cin) with tap-major (dy, dx, ci) ordering; Cin of conv1 is the
    concat [x2, x1] channel order, matching the slab layout in the kernel.
    """
    assert bilinear  # TODO(synk): ConvTranspose2d branch (bilinear=False) not implemented
    cmid = in_channels // 2                    # DoubleConv mid_channels = in_channels // 2
    k = jax.random.split(key, 6)
    w1 = 0.2 * jax.random.normal(k[0], (cmid, in_channels, 3, 3), jnp.float32)
    w2 = 0.2 * jax.random.normal(k[3], (out_channels, cmid, 3, 3), jnp.float32)
    s1, b1 = _bn_fold(k[1], k[2], cmid)
    s2, b2 = _bn_fold(k[4], k[5], out_channels)
    return dict(
        w1=jnp.transpose(w1, (0, 2, 3, 1)).reshape(cmid, 9 * in_channels),
        w2=jnp.transpose(w2, (0, 2, 3, 1)).reshape(out_channels, 9 * cmid),
        s1=s1, b1=b1, s2=s2, b2=b2)


# ----------------------------------------------------------------------------
# Example run
# ----------------------------------------------------------------------------

if __name__ == "__main__":
    # Up(in_channels=32, out_channels=16, bilinear=True)  ->  mid_channels = 16
    # x1: deep feature map (N, 16, 8, 8); x2: skip connection (N, 16, 16, 16)
    N, C1, H1, W1 = 2, 16, 8, 8
    C2, H2, W2 = 16, 16, 16
    in_channels, out_channels = C1 + C2, 16

    root = jax.random.PRNGKey(0)
    kx1, kx2, kp = jax.random.split(root, 3)
    x1 = jax.random.normal(kx1, (N, C1, H1, W1), jnp.float32)
    x2 = jax.random.normal(kx2, (N, C2, H2, W2), jnp.float32)
    params = init_up_params(kp, in_channels, out_channels)

    fwd = jax.jit(up_forward)
    out = fwd(x1, x2, params)
    jax.block_until_ready(out)

    assert out.shape == (N, out_channels, H2, W2)
    assert bool(jnp.all(jnp.isfinite(out.astype(jnp.float32))))
    print("KERNEL_OK")
</pallas_src>

<mosaic_0001>
module attributes {stable_mosaic.version = 11 : i64} {
  func.func @_up_fused_kernel(%arg0: i32, %arg1: memref<64x256xbf16, #tpu.memory_space<vmem>>, %arg2: memref<9x256xf32, #tpu.memory_space<vmem>>, %arg3: memref<1x16x64xbf16, #tpu.memory_space<vmem>>, %arg4: memref<1x16x256xbf16, #tpu.memory_space<vmem>>, %arg5: memref<16x288xbf16, #tpu.memory_space<vmem>>, %arg6: memref<16x1xf32, #tpu.memory_space<vmem>>, %arg7: memref<16x1xf32, #tpu.memory_space<vmem>>, %arg8: memref<16x144xbf16, #tpu.memory_space<vmem>>, %arg9: memref<16x1xf32, #tpu.memory_space<vmem>>, %arg10: memref<16x1xf32, #tpu.memory_space<vmem>>, %arg11: memref<1x16x256xbf16, #tpu.memory_space<vmem>>, %arg12: memref<16x512xbf16, #tpu.memory_space<vmem>>, %arg13: memref<16x512xbf16, #tpu.memory_space<vmem>>, %arg14: memref<16x512xbf16, #tpu.memory_space<vmem>>, %arg15: memref<288x256xbf16, #tpu.memory_space<vmem>>, %arg16: memref<144x256xbf16, #tpu.memory_space<vmem>>) attributes {dimension_semantics = [#tpu.dimension_semantics<parallel>], iteration_bounds = array<i64: 2>, scalar_prefetch = 0 : i64, scratch_operands = 5 : i64, tpu.core_type = #tpu.core_type<tc>, window_params = [{pipeline_mode = #tpu.pipeline_mode<synchronous>, transform_indices = @transform_0, window_bounds = array<i64: 64, 256>}, {pipeline_mode = #tpu.pipeline_mode<synchronous>, transform_indices = @transform_1, window_bounds = array<i64: 9, 256>}, {transform_indices = @transform_2, window_bounds = array<i64: 1, 16, 64>}, {transform_indices = @transform_3, window_bounds = array<i64: 1, 16, 256>}, {pipeline_mode = #tpu.pipeline_mode<synchronous>, transform_indices = @transform_4, window_bounds = array<i64: 16, 288>}, {pipeline_mode = #tpu.pipeline_mode<synchronous>, transform_indices = @transform_5, window_bounds = array<i64: 16, 1>}, {pipeline_mode = #tpu.pipeline_mode<synchronous>, transform_indices = @transform_6, window_bounds = array<i64: 16, 1>}, {pipeline_mode = #tpu.pipeline_mode<synchronous>, transform_indices = @transform_7, window_bounds = array<i64: 16, 144>}, {pipeline_mode = #tpu.pipeline_mode<synchronous>, transform_indices = @transform_8, window_bounds = array<i64: 16, 1>}, {pipeline_mode = #tpu.pipeline_mode<synchronous>, transform_indices = @transform_9, window_bounds = array<i64: 16, 1>}, {transform_indices = @transform_10, window_bounds = array<i64: 1, 16, 256>}]} {
    %c0 = arith.constant 0 : index
    %c0_0 = arith.constant 0 : index
    %c0_1 = arith.constant 0 : index
    %0 = vector.load %arg4[%c0, %c0_0, %c0_1] : memref<1x16x256xbf16, #tpu.memory_space<vmem>>, vector<1x16x256xbf16>
    %1 = vector.shape_cast %0 : vector<1x16x256xbf16> to vector<16x256xbf16>
    %c0_2 = arith.constant 0 : index
    %c128 = arith.constant 128 : index
    %2 = vector.load %arg12[%c0_2, %c128] : memref<16x512xbf16, #tpu.memory_space<vmem>>, vector<16x256xbf16>
    tpu.vector_store %arg12[%c0_2, %c128], %1 {strides = array<i32>} : memref<16x512xbf16, #tpu.memory_space<vmem>>, vector<16x256xbf16>,
    %c0_3 = arith.constant 0 : index
    %c0_4 = arith.constant 0 : index
    %c0_5 = arith.constant 0 : index
    %3 = vector.load %arg3[%c0_3, %c0_4, %c0_5] : memref<1x16x64xbf16, #tpu.memory_space<vmem>>, vector<1x16x64xbf16>
    %4 = vector.shape_cast %3 : vector<1x16x64xbf16> to vector<16x64xbf16>
    %c0_6 = arith.constant 0 : index
    %c0_7 = arith.constant 0 : index
    %5 = vector.load %arg1[%c0_6, %c0_7] : memref<64x256xbf16, #tpu.memory_space<vmem>>, vector<64x256xbf16>
    %cst = arith.constant dense<0.000000e+00> : vector<16x256xf32>
    %6 = tpu.matmul %4, %5, %cst {dimension_numbers = #tpu.dot_dimension_numbers<[1], [0], [0], [1], [0, 0, 1, 1], [], []>} : vector<16x64xbf16>, vector<64x256xbf16>, vector<16x256xf32> -> vector<16x256xf32>
    %7 = arith.truncf %6 : vector<16x256xf32> to vector<16x256xbf16>
    %c0_8 = arith.constant 0 : index
    %c128_9 = arith.constant 128 : index
    %8 = vector.load %arg13[%c0_8, %c128_9] : memref<16x512xbf16, #tpu.memory_space<vmem>>, vector<16x256xbf16>
    tpu.vector_store %arg13[%c0_8, %c128_9], %7 {strides = array<i32>} : memref<16x512xbf16, #tpu.memory_space<vmem>>, vector<16x256xbf16>,
    %c0_10 = arith.constant 0 : index
    %c111 = arith.constant 111 : index
    %9 = vector.load %arg12[%c0_10, %c111] : memref<16x512xbf16, #tpu.memory_space<vmem>>, vector<16x256xbf16>
    %c0_11 = arith.constant 0 : index
    %c0_12 = arith.constant 0 : index
    %10 = vector.load %arg2[%c0_11, %c0_12] : memref<9x256xf32, #tpu.memory_space<vmem>>, vector<1x256xf32>
    %cst_13 = arith.constant 0.000000e+00 : f32
    %11 = vector.broadcast %cst_13 : f32 to vector<1x256xf32>
    %12 = arith.cmpf ogt, %10, %11 : vector<1x256xf32>
    %c0_i32 = arith.constant 0 : i32
    %13 = arith.sitofp %c0_i32 : i32 to bf16
    %14 = vector.shape_cast %12 : vector<1x256xi1> to vector<1x256xi1>
    %15 = vector.broadcast %14 : vector<1x256xi1> to vector<16x256xi1>
    %16 = vector.broadcast %13 : bf16 to vector<16x256xbf16>
    %17 = arith.select %15, %9, %16 : vector<16x256xi1>, vector<16x256xbf16>
    %c0_14 = arith.constant 0 : index
    %c0_15 = arith.constant 0 : index
    %18 = vector.load %arg15[%c0_14, %c0_15] : memref<288x256xbf16, #tpu.memory_space<vmem>>, vector<16x256xbf16>
    tpu.vector_store %arg15[%c0_14, %c0_15], %17 {strides = array<i32>} : memref<288x256xbf16, #tpu.memory_space<vmem>>, vector<16x256xbf16>,
    %c0_16 = arith.constant 0 : index
    %c111_17 = arith.constant 111 : index
    %19 = vector.load %arg13[%c0_16, %c111_17] : memref<16x512xbf16, #tpu.memory_space<vmem>>, vector<16x256xbf16>
    %c0_18 = arith.constant 0 : index
    %c0_19 = arith.constant 0 : index
    %20 = vector.load %arg2[%c0_18, %c0_19] : memref<9x256xf32, #tpu.memory_space<vmem>>, vector<1x256xf32>
    %cst_20 = arith.constant 0.000000e+00 : f32
    %21 = vector.broadcast %cst_20 : f32 to vector<1x256xf32>
    %22 = arith.cmpf ogt, %20, %21 : vector<1x256xf32>
    %c0_i32_21 = arith.constant 0 : i32
    %23 = arith.sitofp %c0_i32_21 : i32 to bf16
    %24 = vector.shape_cast %22 : vector<1x256xi1> to vector<1x256xi1>
    %25 = vector.broadcast %24 : vector<1x256xi1> to vector<16x256xi1>
    %26 = vector.broadcast %23 : bf16 to vector<16x256xbf16>
    %27 = arith.select %25, %19, %26 : vector<16x256xi1>, vector<16x256xbf16>
    %c16 = arith.constant 16 : index
    %c0_22 = arith.constant 0 : index
    %28 = vector.load %arg15[%c16, %c0_22] : memref<288x256xbf16, #tpu.memory_space<vmem>>, vector<16x256xbf16>
    tpu.vector_store %arg15[%c16, %c0_22], %27 {strides = array<i32>} : memref<288x256xbf16, #tpu.memory_space<vmem>>, vector<16x256xbf16>,
    %c0_23 = arith.constant 0 : index
    %c112 = arith.constant 112 : index
    %29 = vector.load %arg12[%c0_23, %c112] : memref<16x512xbf16, #tpu.memory_space<vmem>>, vector<16x256xbf16>
    %c1 = arith.constant 1 : index
    %c0_24 = arith.constant 0 : index
    %30 = vector.load %arg2[%c1, %c0_24] : memref<9x256xf32, #tpu.memory_space<vmem>>, vector<1x256xf32>
    %cst_25 = arith.constant 0.000000e+00 : f32
    %31 = vector.broadcast %cst_25 : f32 to vector<1x256xf32>
    %32 = arith.cmpf ogt, %30, %31 : vector<1x256xf32>
    %c0_i32_26 = arith.constant 0 : i32
    %33 = arith.sitofp %c0_i32_26 : i32 to bf16
    %34 = vector.shape_cast %32 : vector<1x256xi1> to vector<1x256xi1>
    %35 = vector.broadcast %34 : vector<1x256xi1> to vector<16x256xi1>
    %36 = vector.broadcast %33 : bf16 to vector<16x256xbf16>
    %37 = arith.select %35, %29, %36 : vector<16x256xi1>, vector<16x256xbf16>
    %c32 = arith.constant 32 : index
    %c0_27 = arith.constant 0 : index
    %38 = vector.load %arg15[%c32, %c0_27] : memref<288x256xbf16, #tpu.memory_space<vmem>>, vector<16x256xbf16>
    tpu.vector_store %arg15[%c32, %c0_27], %37 {strides = array<i32>} : memref<288x256xbf16, #tpu.memory_space<vmem>>, vector<16x256xbf16>,
    %c0_28 = arith.constant 0 : index
    %c112_29 = arith.constant 112 : index
    %39 = vector.load %arg13[%c0_28, %c112_29] : memref<16x512xbf16, #tpu.memory_space<vmem>>, vector<16x256xbf16>
    %c1_30 = arith.constant 1 : index
    %c0_31 = arith.constant 0 : index
    %40 = vector.load %arg2[%c1_30, %c0_31] : memref<9x256xf32, #tpu.memory_space<vmem>>, vector<1x256xf32>
    %cst_32 = arith.constant 0.000000e+00 : f32
    %41 = vector.broadcast %cst_32 : f32 to vector<1x256xf32>
    %42 = arith.cmpf ogt, %40, %41 : vector<1x256xf32>
    %c0_i32_33 = arith.constant 0 : i32
    %43 = arith.sitofp %c0_i32_33 : i32 to bf16
    %44 = vector.shape_cast %42 : vector<1x256xi1> to vector<1x256xi1>
    %45 = vector.broadcast %44 : vector<1x256xi1> to vector<16x256xi1>
    %46 = vector.broadcast %43 : bf16 to vector<16x256xbf16>
    %47 = arith.select %45, %39, %46 : vector<16x256xi1>, vector<16x256xbf16>
    %c48 = arith.constant 48 : index
    %c0_34 = arith.constant 0 : index
    %48 = vector.load %arg15[%c48, %c0_34] : memref<288x256xbf16, #tpu.memory_space<vmem>>, vector<16x256xbf16>
    tpu.vector_store %arg15[%c48, %c0_34], %47 {strides = array<i32>} : memref<288x256xbf16, #tpu.memory_space<vmem>>, vector<16x256xbf16>,
    %c0_35 = arith.constant 0 : index
    %c113 = arith.constant 113 : index
    %49 = vector.load %arg12[%c0_35, %c113] : memref<16x512xbf16, #tpu.memory_space<vmem>>, vector<16x256xbf16>
    %c2 = arith.constant 2 : index
    %c0_36 = arith.constant 0 : index
    %50 = vector.load %arg2[%c2, %c0_36] : memref<9x256xf32, #tpu.memory_space<vmem>>, vector<1x256xf32>
    %cst_37 = arith.constant 0.000000e+00 : f32
    %51 = vector.broadcast %cst_37 : f32 to vector<1x256xf32>
    %52 = arith.cmpf ogt, %50, %51 : vector<1x256xf32>
    %c0_i32_38 = arith.constant 0 : i32
    %53 = arith.sitofp %c0_i32_38 : i32 to bf16
    %54 = vector.shape_cast %52 : vector<1x256xi1> to vector<1x256xi1>
    %55 = vector.broadcast %54 : vector<1x256xi1> to vector<16x256xi1>
    %56 = vector.broadcast %53 : bf16 to vector<16x256xbf16>
    %57 = arith.select %55, %49, %56 : vector<16x256xi1>, vector<16x256xbf16>
    %c64 = arith.constant 64 : index
    %c0_39 = arith.constant 0 : index
    %58 = vector.load %arg15[%c64, %c0_39] : memref<288x256xbf16, #tpu.memory_space<vmem>>, vector<16x256xbf16>
    tpu.vector_store %arg15[%c64, %c0_39], %57 {strides = array<i32>} : memref<288x256xbf16, #tpu.memory_space<vmem>>, vector<16x256xbf16>,
    %c0_40 = arith.constant 0 : index
    %c113_41 = arith.constant 113 : index
    %59 = vector.load %arg13[%c0_40, %c113_41] : memref<16x512xbf16, #tpu.memory_space<vmem>>, vector<16x256xbf16>
    %c2_42 = arith.constant 2 : index
    %c0_43 = arith.constant 0 : index
    %60 = vector.load %arg2[%c2_42, %c0_43] : memref<9x256xf32, #tpu.memory_space<vmem>>, vector<1x256xf32>
    %cst_44 = arith.constant 0.000000e+00 : f32
    %61 = vector.broadcast %cst_44 : f32 to vector<1x256xf32>
    %62 = arith.cmpf ogt, %60, %61 : vector<1x256xf32>
    %c0_i32_45 = arith.constant 0 : i32
    %63 = arith.sitofp %c0_i32_45 : i32 to bf16
    %64 = vector.shape_cast %62 : vector<1x256xi1> to vector<1x256xi1>
    %65 = vector.broadcast %64 : vector<1x256xi1> to vector<16x256xi1>
    %66 = vector.broadcast %63 : bf16 to vector<16x256xbf16>
    %67 = arith.select %65, %59, %66 : vector<16x256xi1>, vector<16x256xbf16>
    %c80 = arith.constant 80 : index
    %c0_46 = arith.constant 0 : index
    %68 = vector.load %arg15[%c80, %c0_46] : memref<288x256xbf16, #tpu.memory_space<vmem>>, vector<16x256xbf16>
    tpu.vector_store %arg15[%c80, %c0_46], %67 {strides = array<i32>} : memref<288x256xbf16, #tpu.memory_space<vmem>>, vector<16x256xbf16>,
    %c0_47 = arith.constant 0 : index
    %c127 = arith.constant 127 : index
    %69 = vector.load %arg12[%c0_47, %c127] : memref<16x512xbf16, #tpu.memory_space<vmem>>, vector<16x256xbf16>
    %c3 = arith.constant 3 : index
    %c0_48 = arith.constant 0 : index
    %70 = vector.load %arg2[%c3, %c0_48] : memref<9x256xf32, #tpu.memory_space<vmem>>, vector<1x256xf32>
    %cst_49 = arith.constant 0.000000e+00 : f32
    %71 = vector.broadcast %cst_49 : f32 to vector<1x256xf32>
    %72 = arith.cmpf ogt, %70, %71 : vector<1x256xf32>
    %c0_i32_50 = arith.constant 0 : i32
    %73 = arith.sitofp %c0_i32_50 : i32 to bf16
    %74 = vector.shape_cast %72 : vector<1x256xi1> to vector<1x256xi1>
    %75 = vector.broadcast %74 : vector<1x256xi1> to vector<16x256xi1>
    %76 = vector.broadcast %73 : bf16 to vector<16x256xbf16>
    %77 = arith.select %75, %69, %76 : vector<16x256xi1>, vector<16x256xbf16>
    %c96 = arith.constant 96 : index
    %c0_51 = arith.constant 0 : index
    %78 = vector.load %arg15[%c96, %c0_51] : memref<288x256xbf16, #tpu.memory_space<vmem>>, vector<16x256xbf16>
    tpu.vector_store %arg15[%c96, %c0_51], %77 {strides = array<i32>} : memref<288x256xbf16, #tpu.memory_space<vmem>>, vector<16x256xbf16>,
    %c0_52 = arith.constant 0 : index
    %c127_53 = arith.constant 127 : index
    %79 = vector.load %arg13[%c0_52, %c127_53] : memref<16x512xbf16, #tpu.memory_space<vmem>>, vector<16x256xbf16>
    %c3_54 = arith.constant 3 : index
    %c0_55 = arith.constant 0 : index
    %80 = vector.load %arg2[%c3_54, %c0_55] : memref<9x256xf32, #tpu.memory_space<vmem>>, vector<1x256xf32>
    %cst_56 = arith.constant 0.000000e+00 : f32
    %81 = vector.broadcast %cst_56 : f32 to vector<1x256xf32>
    %82 = arith.cmpf ogt, %80, %81 : vector<1x256xf32>
    %c0_i32_57 = arith.constant 0 : i32
    %83 = arith.sitofp %c0_i32_57 : i32 to bf16
    %84 = vector.shape_cast %82 : vector<1x256xi1> to vector<1x256xi1>
    %85 = vector.broadcast %84 : vector<1x256xi1> to vector<16x256xi1>
    %86 = vector.broadcast %83 : bf16 to vector<16x256xbf16>
    %87 = arith.select %85, %79, %86 : vector<16x256xi1>, vector<16x256xbf16>
    %c112_58 = arith.constant 112 : index
    %c0_59 = arith.constant 0 : index
    %88 = vector.load %arg15[%c112_58, %c0_59] : memref<288x256xbf16, #tpu.memory_space<vmem>>, vector<16x256xbf16>
    tpu.vector_store %arg15[%c112_58, %c0_59], %87 {strides = array<i32>} : memref<288x256xbf16, #tpu.memory_space<vmem>>, vector<16x256xbf16>,
    %c0_60 = arith.constant 0 : index
    %c128_61 = arith.constant 128 : index
    %89 = vector.load %arg12[%c0_60, %c128_61] : memref<16x512xbf16, #tpu.memory_space<vmem>>, vector<16x256xbf16>
    %c128_62 = arith.constant 128 : index
    %c0_63 = arith.constant 0 : index
    %90 = vector.load %arg15[%c128_62, %c0_63] : memref<288x256xbf16, #tpu.memory_space<vmem>>, vector<16x256xbf16>
    tpu.vector_store %arg15[%c128_62, %c0_63], %89 {strides = array<i32>} : memref<288x256xbf16, #tpu.memory_space<vmem>>, vector<16x256xbf16>,
    %c0_64 = arith.constant 0 : index
    %c128_65 = arith.constant 128 : index
    %91 = vector.load %arg13[%c0_64, %c128_65] : memref<16x512xbf16, #tpu.memory_space<vmem>>, vector<16x256xbf16>
    %c144 = arith.constant 144 : index
    %c0_66 = arith.constant 0 : index
    %92 = vector.load %arg15[%c144, %c0_66] : memref<288x256xbf16, #tpu.memory_space<vmem>>, vector<16x256xbf16>
    tpu.vector_store %arg15[%c144, %c0_66], %91 {strides = array<i32>} : memref<288x256xbf16, #tpu.memory_space<vmem>>, vector<16x256xbf16>,
    %c0_67 = arith.constant 0 : index
    %c129 = arith.constant 129 : index
    %93 = vector.load %arg12[%c0_67, %c129] : memref<16x512xbf16, #tpu.memory_space<vmem>>, vector<16x256xbf16>
    %c5 = arith.constant 5 : index
    %c0_68 = arith.constant 0 : index
    %94 = vector.load %arg2[%c5, %c0_68] : memref<9x256xf32, #tpu.memory_space<vmem>>, vector<1x256xf32>
    %cst_69 = arith.constant 0.000000e+00 : f32
    %95 = vector.broadcast %cst_69 : f32 to vector<1x256xf32>
    %96 = arith.cmpf ogt, %94, %95 : vector<1x256xf32>
    %c0_i32_70 = arith.constant 0 : i32
    %97 = arith.sitofp %c0_i32_70 : i32 to bf16
    %98 = vector.shape_cast %96 : vector<1x256xi1> to vector<1x256xi1>
    %99 = vector.broadcast %98 : vector<1x256xi1> to vector<16x256xi1>
    %100 = vector.broadcast %97 : bf16 to vector<16x256xbf16>
    %101 = arith.select %99, %93, %100 : vector<16x256xi1>, vector<16x256xbf16>
    %c160 = arith.constant 160 : index
    %c0_71 = arith.constant 0 : index
    %102 = vector.load %arg15[%c160, %c0_71] : memref<288x256xbf16, #tpu.memory_space<vmem>>, vector<16x256xbf16>
    tpu.vector_store %arg15[%c160, %c0_71], %101 {strides = array<i32>} : memref<288x256xbf16, #tpu.memory_space<vmem>>, vector<16x256xbf16>,
    %c0_72 = arith.constant 0 : index
    %c129_73 = arith.constant 129 : index
    %103 = vector.load %arg13[%c0_72, %c129_73] : memref<16x512xbf16, #tpu.memory_space<vmem>>, vector<16x256xbf16>
    %c5_74 = arith.constant 5 : index
    %c0_75 = arith.constant 0 : index
    %104 = vector.load %arg2[%c5_74, %c0_75] : memref<9x256xf32, #tpu.memory_space<vmem>>, vector<1x256xf32>
    %cst_76 = arith.constant 0.000000e+00 : f32
    %105 = vector.broadcast %cst_76 : f32 to vector<1x256xf32>
    %106 = arith.cmpf ogt, %104, %105 : vector<1x256xf32>
    %c0_i32_77 = arith.constant 0 : i32
    %107 = arith.sitofp %c0_i32_77 : i32 to bf16
    %108 = vector.shape_cast %106 : vector<1x256xi1> to vector<1x256xi1>
    %109 = vector.broadcast %108 : vector<1x256xi1> to vector<16x256xi1>
    %110 = vector.broadcast %107 : bf16 to vector<16x256xbf16>
    %111 = arith.select %109, %103, %110 : vector<16x256xi1>, vector<16x256xbf16>
    %c176 = arith.constant 176 : index
    %c0_78 = arith.constant 0 : index
    %112 = vector.load %arg15[%c176, %c0_78] : memref<288x256xbf16, #tpu.memory_space<vmem>>, vector<16x256xbf16>
    tpu.vector_store %arg15[%c176, %c0_78], %111 {strides = array<i32>} : memref<288x256xbf16, #tpu.memory_space<vmem>>, vector<16x256xbf16>,
    %c0_79 = arith.constant 0 : index
    %c143 = arith.constant 143 : index
    %113 = vector.load %arg12[%c0_79, %c143] : memref<16x512xbf16, #tpu.memory_space<vmem>>, vector<16x256xbf16>
    %c6 = arith.constant 6 : index
    %c0_80 = arith.constant 0 : index
    %114 = vector.load %arg2[%c6, %c0_80] : memref<9x256xf32, #tpu.memory_space<vmem>>, vector<1x256xf32>
    %cst_81 = arith.constant 0.000000e+00 : f32
    %115 = vector.broadcast %cst_81 : f32 to vector<1x256xf32>
    %116 = arith.cmpf ogt, %114, %115 : vector<1x256xf32>
    %c0_i32_82 = arith.constant 0 : i32
    %117 = arith.sitofp %c0_i32_82 : i32 to bf16
    %118 = vector.shape_cast %116 : vector<1x256xi1> to vector<1x256xi1>
    %119 = vector.broadcast %118 : vector<1x256xi1> to vector<16x256xi1>
    %120 = vector.broadcast %117 : bf16 to vector<16x256xbf16>
    %121 = arith.select %119, %113, %120 : vector<16x256xi1>, vector<16x256xbf16>
    %c192 = arith.constant 192 : index
    %c0_83 = arith.constant 0 : index
    %122 = vector.load %arg15[%c192, %c0_83] : memref<288x256xbf16, #tpu.memory_space<vmem>>, vector<16x256xbf16>
    tpu.vector_store %arg15[%c192, %c0_83], %121 {strides = array<i32>} : memref<288x256xbf16, #tpu.memory_space<vmem>>, vector<16x256xbf16>,
    %c0_84 = arith.constant 0 : index
    %c143_85 = arith.constant 143 : index
    %123 = vector.load %arg13[%c0_84, %c143_85] : memref<16x512xbf16, #tpu.memory_space<vmem>>, vector<16x256xbf16>
    %c6_86 = arith.constant 6 : index
    %c0_87 = arith.constant 0 : index
    %124 = vector.load %arg2[%c6_86, %c0_87] : memref<9x256xf32, #tpu.memory_space<vmem>>, vector<1x256xf32>
    %cst_88 = arith.constant 0.000000e+00 : f32
    %125 = vector.broadcast %cst_88 : f32 to vector<1x256xf32>
    %126 = arith.cmpf ogt, %124, %125 : vector<1x256xf32>
    %c0_i32_89 = arith.constant 0 : i32
    %127 = arith.sitofp %c0_i32_89 : i32 to bf16
    %128 = vector.shape_cast %126 : vector<1x256xi1> to vector<1x256xi1>
    %129 = vector.broadcast %128 : vector<1x256xi1> to vector<16x256xi1>
    %130 = vector.broadcast %127 : bf16 to vector<16x256xbf16>
    %131 = arith.select %129, %123, %130 : vector<16x256xi1>, vector<16x256xbf16>
    %c208 = arith.constant 208 : index
    %c0_90 = arith.constant 0 : index
    %132 = vector.load %arg15[%c208, %c0_90] : memref<288x256xbf16, #tpu.memory_space<vmem>>, vector<16x256xbf16>
    tpu.vector_store %arg15[%c208, %c0_90], %131 {strides = array<i32>} : memref<288x256xbf16, #tpu.memory_space<vmem>>, vector<16x256xbf16>,
    %c0_91 = arith.constant 0 : index
    %c144_92 = arith.constant 144 : index
    %133 = vector.load %arg12[%c0_91, %c144_92] : memref<16x512xbf16, #tpu.memory_space<vmem>>, vector<16x256xbf16>
    %c7 = arith.constant 7 : index
    %c0_93 = arith.constant 0 : index
    %134 = vector.load %arg2[%c7, %c0_93] : memref<9x256xf32, #tpu.memory_space<vmem>>, vector<1x256xf32>
    %cst_94 = arith.constant 0.000000e+00 : f32
    %135 = vector.broadcast %cst_94 : f32 to vector<1x256xf32>
    %136 = arith.cmpf ogt, %134, %135 : vector<1x256xf32>
    %c0_i32_95 = arith.constant 0 : i32
    %137 = arith.sitofp %c0_i32_95 : i32 to bf16
    %138 = vector.shape_cast %136 : vector<1x256xi1> to vector<1x256xi1>
    %139 = vector.broadcast %138 : vector<1x256xi1> to vector<16x256xi1>
    %140 = vector.broadcast %137 : bf16 to vector<16x256xbf16>
    %141 = arith.select %139, %133, %140 : vector<16x256xi1>, vector<16x256xbf16>
    %c224 = arith.constant 224 : index
    %c0_96 = arith.constant 0 : index
    %142 = vector.load %arg15[%c224, %c0_96] : memref<288x256xbf16, #tpu.memory_space<vmem>>, vector<16x256xbf16>
    tpu.vector_store %arg15[%c224, %c0_96], %141 {strides = array<i32>} : memref<288x256xbf16, #tpu.memory_space<vmem>>, vector<16x256xbf16>,
    %c0_97 = arith.constant 0 : index
    %c144_98 = arith.constant 144 : index
    %143 = vector.load %arg13[%c0_97, %c144_98] : memref<16x512xbf16, #tpu.memory_space<vmem>>, vector<16x256xbf16>
    %c7_99 = arith.constant 7 : index
    %c0_100 = arith.constant 0 : index
    %144 = vector.load %arg2[%c7_99, %c0_100] : memref<9x256xf32, #tpu.memory_space<vmem>>, vector<1x256xf32>
    %cst_101 = arith.constant 0.000000e+00 : f32
    %145 = vector.broadcast %cst_101 : f32 to vector<1x256xf32>
    %146 = arith.cmpf ogt, %144, %145 : vector<1x256xf32>
    %c0_i32_102 = arith.constant 0 : i32
    %147 = arith.sitofp %c0_i32_102 : i32 to bf16
    %148 = vector.shape_cast %146 : vector<1x256xi1> to vector<1x256xi1>
    %149 = vector.broadcast %148 : vector<1x256xi1> to vector<16x256xi1>
    %150 = vector.broadcast %147 : bf16 to vector<16x256xbf16>
    %151 = arith.select %149, %143, %150 : vector<16x256xi1>, vector<16x256xbf16>
    %c240 = arith.constant 240 : index
    %c0_103 = arith.constant 0 : index
    %152 = vector.load %arg15[%c240, %c0_103] : memref<288x256xbf16, #tpu.memory_space<vmem>>, vector<16x256xbf16>
    tpu.vector_store %arg15[%c240, %c0_103], %151 {strides = array<i32>} : memref<288x256xbf16, #tpu.memory_space<vmem>>, vector<16x256xbf16>,
    %c0_104 = arith.constant 0 : index
    %c145 = arith.constant 145 : index
    %153 = vector.load %arg12[%c0_104, %c145] : memref<16x512xbf16, #tpu.memory_space<vmem>>, vector<16x256xbf16>
    %c8 = arith.constant 8 : index
    %c0_105 = arith.constant 0 : index
    %154 = vector.load %arg2[%c8, %c0_105] : memref<9x256xf32, #tpu.memory_space<vmem>>, vector<1x256xf32>
    %cst_106 = arith.constant 0.000000e+00 : f32
    %155 = vector.broadcast %cst_106 : f32 to vector<1x256xf32>
    %156 = arith.cmpf ogt, %154, %155 : vector<1x256xf32>
    %c0_i32_107 = arith.constant 0 : i32
    %157 = arith.sitofp %c0_i32_107 : i32 to bf16
    %158 = vector.shape_cast %156 : vector<1x256xi1> to vector<1x256xi1>
    %159 = vector.broadcast %158 : vector<1x256xi1> to vector<16x256xi1>
    %160 = vector.broadcast %157 : bf16 to vector<16x256xbf16>
    %161 = arith.select %159, %153, %160 : vector<16x256xi1>, vector<16x256xbf16>
    %c256 = arith.constant 256 : index
    %c0_108 = arith.constant 0 : index
    %162 = vector.load %arg15[%c256, %c0_108] : memref<288x256xbf16, #tpu.memory_space<vmem>>, vector<16x256xbf16>
    tpu.vector_store %arg15[%c256, %c0_108], %161 {strides = array<i32>} : memref<288x256xbf16, #tpu.memory_space<vmem>>, vector<16x256xbf16>,
    %c0_109 = arith.constant 0 : index
    %c145_110 = arith.constant 145 : index
    %163 = vector.load %arg13[%c0_109, %c145_110] : memref<16x512xbf16, #tpu.memory_space<vmem>>, vector<16x256xbf16>
    %c8_111 = arith.constant 8 : index
    %c0_112 = arith.constant 0 : index
    %164 = vector.load %arg2[%c8_111, %c0_112] : memref<9x256xf32, #tpu.memory_space<vmem>>, vector<1x256xf32>
    %cst_113 = arith.constant 0.000000e+00 : f32
    %165 = vector.broadcast %cst_113 : f32 to vector<1x256xf32>
    %166 = arith.cmpf ogt, %164, %165 : vector<1x256xf32>
    %c0_i32_114 = arith.constant 0 : i32
    %167 = arith.sitofp %c0_i32_114 : i32 to bf16
    %168 = vector.shape_cast %166 : vector<1x256xi1> to vector<1x256xi1>
    %169 = vector.broadcast %168 : vector<1x256xi1> to vector<16x256xi1>
    %170 = vector.broadcast %167 : bf16 to vector<16x256xbf16>
    %171 = arith.select %169, %163, %170 : vector<16x256xi1>, vector<16x256xbf16>
    %c272 = arith.constant 272 : index
    %c0_115 = arith.constant 0 : index
    %172 = vector.load %arg15[%c272, %c0_115] : memref<288x256xbf16, #tpu.memory_space<vmem>>, vector<16x256xbf16>
    tpu.vector_store %arg15[%c272, %c0_115], %171 {strides = array<i32>} : memref<288x256xbf16, #tpu.memory_space<vmem>>, vector<16x256xbf16>,
    %c0_116 = arith.constant 0 : index
    %c0_117 = arith.constant 0 : index
    %173 = vector.load %arg5[%c0_116, %c0_117] : memref<16x288xbf16, #tpu.memory_space<vmem>>, vector<16x288xbf16>
    %c0_118 = arith.constant 0 : index
    %c0_119 = arith.constant 0 : index
    %174 = vector.load %arg15[%c0_118, %c0_119] : memref<288x256xbf16, #tpu.memory_space<vmem>>, vector<288x256xbf16>
    %cst_120 = arith.constant dense<0.000000e+00> : vector<16x256xf32>
    %175 = tpu.matmul %173, %174, %cst_120 {dimension_numbers = #tpu.dot_dimension_numbers<[1], [0], [0], [1], [0, 0, 1, 1], [], []>} : vector<16x288xbf16>, vector<288x256xbf16>, vector<16x256xf32> -> vector<16x256xf32>
    %c0_121 = arith.constant 0 : index
    %c0_122 = arith.constant 0 : index
    %176 = vector.load %arg6[%c0_121, %c0_122] : memref<16x1xf32, #tpu.memory_space<vmem>>, vector<16x1xf32>
    %177 = vector.broadcast %176 : vector<16x1xf32> to vector<16x256xf32>
    %178 = arith.mulf %175, %177 : vector<16x256xf32>
    %c0_123 = arith.constant 0 : index
    %c0_124 = arith.constant 0 : index
    %179 = vector.load %arg7[%c0_123, %c0_124] : memref<16x1xf32, #tpu.memory_space<vmem>>, vector<16x1xf32>
    %180 = vector.broadcast %179 : vector<16x1xf32> to vector<16x256xf32>
    %181 = arith.addf %178, %180 : vector<16x256xf32>
    %cst_125 = arith.constant 0.000000e+00 : f32
    %182 = vector.broadcast %cst_125 : f32 to vector<16x256xf32>
    %183 = arith.maximumf %181, %182 : vector<16x256xf32>
    %184 = arith.truncf %183 : vector<16x256xf32> to vector<16x256xbf16>
    %c0_126 = arith.constant 0 : index
    %c128_127 = arith.constant 128 : index
    %185 = vector.load %arg14[%c0_126, %c128_127] : memref<16x512xbf16, #tpu.memory_space<vmem>>, vector<16x256xbf16>
    tpu.vector_store %arg14[%c0_126, %c128_127], %184 {strides = array<i32>} : memref<16x512xbf16, #tpu.memory_space<vmem>>, vector<16x256xbf16>,
    %c0_128 = arith.constant 0 : index
    %c111_129 = arith.constant 111 : index
    %186 = vector.load %arg14[%c0_128, %c111_129] : memref<16x512xbf16, #tpu.memory_space<vmem>>, vector<16x256xbf16>
    %c0_130 = arith.constant 0 : index
    %c0_131 = arith.constant 0 : index
    %187 = vector.load %arg2[%c0_130, %c0_131] : memref<9x256xf32, #tpu.memory_space<vmem>>, vector<1x256xf32>
    %cst_132 = arith.constant 0.000000e+00 : f32
    %188 = vector.broadcast %cst_132 : f32 to vector<1x256xf32>
    %189 = arith.cmpf ogt, %187, %188 : vector<1x256xf32>
    %c0_i32_133 = arith.constant 0 : i32
    %190 = arith.sitofp %c0_i32_133 : i32 to bf16
    %191 = vector.shape_cast %189 : vector<1x256xi1> to vector<1x256xi1>
    %192 = vector.broadcast %191 : vector<1x256xi1> to vector<16x256xi1>
    %193 = vector.broadcast %190 : bf16 to vector<16x256xbf16>
    %194 = arith.select %192, %186, %193 : vector<16x256xi1>, vector<16x256xbf16>
    %c0_134 = arith.constant 0 : index
    %c0_135 = arith.constant 0 : index
    %195 = vector.load %arg16[%c0_134, %c0_135] : memref<144x256xbf16, #tpu.memory_space<vmem>>, vector<16x256xbf16>
    tpu.vector_store %arg16[%c0_134, %c0_135], %194 {strides = array<i32>} : memref<144x256xbf16, #tpu.memory_space<vmem>>, vector<16x256xbf16>,
    %c0_136 = arith.constant 0 : index
    %c112_137 = arith.constant 112 : index
    %196 = vector.load %arg14[%c0_136, %c112_137] : memref<16x512xbf16, #tpu.memory_space<vmem>>, vector<16x256xbf16>
    %c1_138 = arith.constant 1 : index
    %c0_139 = arith.constant 0 : index
    %197 = vector.load %arg2[%c1_138, %c0_139] : memref<9x256xf32, #tpu.memory_space<vmem>>, vector<1x256xf32>
    %cst_140 = arith.constant 0.000000e+00 : f32
    %198 = vector.broadcast %cst_140 : f32 to vector<1x256xf32>
    %199 = arith.cmpf ogt, %197, %198 : vector<1x256xf32>
    %c0_i32_141 = arith.constant 0 : i32
    %200 = arith.sitofp %c0_i32_141 : i32 to bf16
    %201 = vector.shape_cast %199 : vector<1x256xi1> to vector<1x256xi1>
    %202 = vector.broadcast %201 : vector<1x256xi1> to vector<16x256xi1>
    %203 = vector.broadcast %200 : bf16 to vector<16x256xbf16>
    %204 = arith.select %202, %196, %203 : vector<16x256xi1>, vector<16x256xbf16>
    %c16_142 = arith.constant 16 : index
    %c0_143 = arith.constant 0 : index
    %205 = vector.load %arg16[%c16_142, %c0_143] : memref<144x256xbf16, #tpu.memory_space<vmem>>, vector<16x256xbf16>
    tpu.vector_store %arg16[%c16_142, %c0_143], %204 {strides = array<i32>} : memref<144x256xbf16, #tpu.memory_space<vmem>>, vector<16x256xbf16>,
    %c0_144 = arith.constant 0 : index
    %c113_145 = arith.constant 113 : index
    %206 = vector.load %arg14[%c0_144, %c113_145] : memref<16x512xbf16, #tpu.memory_space<vmem>>, vector<16x256xbf16>
    %c2_146 = arith.constant 2 : index
    %c0_147 = arith.constant 0 : index
    %207 = vector.load %arg2[%c2_146, %c0_147] : memref<9x256xf32, #tpu.memory_space<vmem>>, vector<1x256xf32>
    %cst_148 = arith.constant 0.000000e+00 : f32
    %208 = vector.broadcast %cst_148 : f32 to vector<1x256xf32>
    %209 = arith.cmpf ogt, %207, %208 : vector<1x256xf32>
    %c0_i32_149 = arith.constant 0 : i32
    %210 = arith.sitofp %c0_i32_149 : i32 to bf16
    %211 = vector.shape_cast %209 : vector<1x256xi1> to vector<1x256xi1>
    %212 = vector.broadcast %211 : vector<1x256xi1> to vector<16x256xi1>
    %213 = vector.broadcast %210 : bf16 to vector<16x256xbf16>
    %214 = arith.select %212, %206, %213 : vector<16x256xi1>, vector<16x256xbf16>
    %c32_150 = arith.constant 32 : index
    %c0_151 = arith.constant 0 : index
    %215 = vector.load %arg16[%c32_150, %c0_151] : memref<144x256xbf16, #tpu.memory_space<vmem>>, vector<16x256xbf16>
    tpu.vector_store %arg16[%c32_150, %c0_151], %214 {strides = array<i32>} : memref<144x256xbf16, #tpu.memory_space<vmem>>, vector<16x256xbf16>,
    %c0_152 = arith.constant 0 : index
    %c127_153 = arith.constant 127 : index
    %216 = vector.load %arg14[%c0_152, %c127_153] : memref<16x512xbf16, #tpu.memory_space<vmem>>, vector<16x256xbf16>
    %c3_154 = arith.constant 3 : index
    %c0_155 = arith.constant 0 : index
    %217 = vector.load %arg2[%c3_154, %c0_155] : memref<9x256xf32, #tpu.memory_space<vmem>>, vector<1x256xf32>
    %cst_156 = arith.constant 0.000000e+00 : f32
    %218 = vector.broadcast %cst_156 : f32 to vector<1x256xf32>
    %219 = arith.cmpf ogt, %217, %218 : vector<1x256xf32>
    %c0_i32_157 = arith.constant 0 : i32
    %220 = arith.sitofp %c0_i32_157 : i32 to bf16
    %221 = vector.shape_cast %219 : vector<1x256xi1> to vector<1x256xi1>
    %222 = vector.broadcast %221 : vector<1x256xi1> to vector<16x256xi1>
    %223 = vector.broadcast %220 : bf16 to vector<16x256xbf16>
    %224 = arith.select %222, %216, %223 : vector<16x256xi1>, vector<16x256xbf16>
    %c48_158 = arith.constant 48 : index
    %c0_159 = arith.constant 0 : index
    %225 = vector.load %arg16[%c48_158, %c0_159] : memref<144x256xbf16, #tpu.memory_space<vmem>>, vector<16x256xbf16>
    tpu.vector_store %arg16[%c48_158, %c0_159], %224 {strides = array<i32>} : memref<144x256xbf16, #tpu.memory_space<vmem>>, vector<16x256xbf16>,
    %c0_160 = arith.constant 0 : index
    %c128_161 = arith.constant 128 : index
    %226 = vector.load %arg14[%c0_160, %c128_161] : memref<16x512xbf16, #tpu.memory_space<vmem>>, vector<16x256xbf16>
    %c64_162 = arith.constant 64 : index
    %c0_163 = arith.constant 0 : index
    %227 = vector.load %arg16[%c64_162, %c0_163] : memref<144x256xbf16, #tpu.memory_space<vmem>>, vector<16x256xbf16>
    tpu.vector_store %arg16[%c64_162, %c0_163], %226 {strides = array<i32>} : memref<144x256xbf16, #tpu.memory_space<vmem>>, vector<16x256xbf16>,
    %c0_164 = arith.constant 0 : index
    %c129_165 = arith.constant 129 : index
    %228 = vector.load %arg14[%c0_164, %c129_165] : memref<16x512xbf16, #tpu.memory_space<vmem>>, vector<16x256xbf16>
    %c5_166 = arith.constant 5 : index
    %c0_167 = arith.constant 0 : index
    %229 = vector.load %arg2[%c5_166, %c0_167] : memref<9x256xf32, #tpu.memory_space<vmem>>, vector<1x256xf32>
    %cst_168 = arith.constant 0.000000e+00 : f32
    %230 = vector.broadcast %cst_168 : f32 to vector<1x256xf32>
    %231 = arith.cmpf ogt, %229, %230 : vector<1x256xf32>
    %c0_i32_169 = arith.constant 0 : i32
    %232 = arith.sitofp %c0_i32_169 : i32 to bf16
    %233 = vector.shape_cast %231 : vector<1x256xi1> to vector<1x256xi1>
    %234 = vector.broadcast %233 : vector<1x256xi1> to vector<16x256xi1>
    %235 = vector.broadcast %232 : bf16 to vector<16x256xbf16>
    %236 = arith.select %234, %228, %235 : vector<16x256xi1>, vector<16x256xbf16>
    %c80_170 = arith.constant 80 : index
    %c0_171 = arith.constant 0 : index
    %237 = vector.load %arg16[%c80_170, %c0_171] : memref<144x256xbf16, #tpu.memory_space<vmem>>, vector<16x256xbf16>
    tpu.vector_store %arg16[%c80_170, %c0_171], %236 {strides = array<i32>} : memref<144x256xbf16, #tpu.memory_space<vmem>>, vector<16x256xbf16>,
    %c0_172 = arith.constant 0 : index
    %c143_173 = arith.constant 143 : index
    %238 = vector.load %arg14[%c0_172, %c143_173] : memref<16x512xbf16, #tpu.memory_space<vmem>>, vector<16x256xbf16>
    %c6_174 = arith.constant 6 : index
    %c0_175 = arith.constant 0 : index
    %239 = vector.load %arg2[%c6_174, %c0_175] : memref<9x256xf32, #tpu.memory_space<vmem>>, vector<1x256xf32>
    %cst_176 = arith.constant 0.000000e+00 : f32
    %240 = vector.broadcast %cst_176 : f32 to vector<1x256xf32>
    %241 = arith.cmpf ogt, %239, %240 : vector<1x256xf32>
    %c0_i32_177 = arith.constant 0 : i32
    %242 = arith.sitofp %c0_i32_177 : i32 to bf16
    %243 = vector.shape_cast %241 : vector<1x256xi1> to vector<1x256xi1>
    %244 = vector.broadcast %243 : vector<1x256xi1> to vector<16x256xi1>
    %245 = vector.broadcast %242 : bf16 to vector<16x256xbf16>
    %246 = arith.select %244, %238, %245 : vector<16x256xi1>, vector<16x256xbf16>
    %c96_178 = arith.constant 96 : index
    %c0_179 = arith.constant 0 : index
    %247 = vector.load %arg16[%c96_178, %c0_179] : memref<144x256xbf16, #tpu.memory_space<vmem>>, vector<16x256xbf16>
    tpu.vector_store %arg16[%c96_178, %c0_179], %246 {strides = array<i32>} : memref<144x256xbf16, #tpu.memory_space<vmem>>, vector<16x256xbf16>,
    %c0_180 = arith.constant 0 : index
    %c144_181 = arith.constant 144 : index
    %248 = vector.load %arg14[%c0_180, %c144_181] : memref<16x512xbf16, #tpu.memory_space<vmem>>, vector<16x256xbf16>
    %c7_182 = arith.constant 7 : index
    %c0_183 = arith.constant 0 : index
    %249 = vector.load %arg2[%c7_182, %c0_183] : memref<9x256xf32, #tpu.memory_space<vmem>>, vector<1x256xf32>
    %cst_184 = arith.constant 0.000000e+00 : f32
    %250 = vector.broadcast %cst_184 : f32 to vector<1x256xf32>
    %251 = arith.cmpf ogt, %249, %250 : vector<1x256xf32>
    %c0_i32_185 = arith.constant 0 : i32
    %252 = arith.sitofp %c0_i32_185 : i32 to bf16
    %253 = vector.shape_cast %251 : vector<1x256xi1> to vector<1x256xi1>
    %254 = vector.broadcast %253 : vector<1x256xi1> to vector<16x256xi1>
    %255 = vector.broadcast %252 : bf16 to vector<16x256xbf16>
    %256 = arith.select %254, %248, %255 : vector<16x256xi1>, vector<16x256xbf16>
    %c112_186 = arith.constant 112 : index
    %c0_187 = arith.constant 0 : index
    %257 = vector.load %arg16[%c112_186, %c0_187] : memref<144x256xbf16, #tpu.memory_space<vmem>>, vector<16x256xbf16>
    tpu.vector_store %arg16[%c112_186, %c0_187], %256 {strides = array<i32>} : memref<144x256xbf16, #tpu.memory_space<vmem>>, vector<16x256xbf16>,
    %c0_188 = arith.constant 0 : index
    %c145_189 = arith.constant 145 : index
    %258 = vector.load %arg14[%c0_188, %c145_189] : memref<16x512xbf16, #tpu.memory_space<vmem>>, vector<16x256xbf16>
    %c8_190 = arith.constant 8 : index
    %c0_191 = arith.constant 0 : index
    %259 = vector.load %arg2[%c8_190, %c0_191] : memref<9x256xf32, #tpu.memory_space<vmem>>, vector<1x256xf32>
    %cst_192 = arith.constant 0.000000e+00 : f32
    %260 = vector.broadcast %cst_192 : f32 to vector<1x256xf32>
    %261 = arith.cmpf ogt, %259, %260 : vector<1x256xf32>
    %c0_i32_193 = arith.constant 0 : i32
    %262 = arith.sitofp %c0_i32_193 : i32 to bf16
    %263 = vector.shape_cast %261 : vector<1x256xi1> to vector<1x256xi1>
    %264 = vector.broadcast %263 : vector<1x256xi1> to vector<16x256xi1>
    %265 = vector.broadcast %262 : bf16 to vector<16x256xbf16>
    %266 = arith.select %264, %258, %265 : vector<16x256xi1>, vector<16x256xbf16>
    %c128_194 = arith.constant 128 : index
    %c0_195 = arith.constant 0 : index
    %267 = vector.load %arg16[%c128_194, %c0_195] : memref<144x256xbf16, #tpu.memory_space<vmem>>, vector<16x256xbf16>
    tpu.vector_store %arg16[%c128_194, %c0_195], %266 {strides = array<i32>} : memref<144x256xbf16, #tpu.memory_space<vmem>>, vector<16x256xbf16>,
    %c0_196 = arith.constant 0 : index
    %c0_197 = arith.constant 0 : index
    %268 = vector.load %arg8[%c0_196, %c0_197] : memref<16x144xbf16, #tpu.memory_space<vmem>>, vector<16x144xbf16>
    %c0_198 = arith.constant 0 : index
    %c0_199 = arith.constant 0 : index
    %269 = vector.load %arg16[%c0_198, %c0_199] : memref<144x256xbf16, #tpu.memory_space<vmem>>, vector<144x256xbf16>
    %cst_200 = arith.constant dense<0.000000e+00> : vector<16x256xf32>
    %270 = tpu.matmul %268, %269, %cst_200 {dimension_numbers = #tpu.dot_dimension_numbers<[1], [0], [0], [1], [0, 0, 1, 1], [], []>} : vector<16x144xbf16>, vector<144x256xbf16>, vector<16x256xf32> -> vector<16x256xf32>
    %c0_201 = arith.constant 0 : index
    %c0_202 = arith.constant 0 : index
    %271 = vector.load %arg9[%c0_201, %c0_202] : memref<16x1xf32, #tpu.memory_space<vmem>>, vector<16x1xf32>
    %272 = vector.broadcast %271 : vector<16x1xf32> to vector<16x256xf32>
    %273 = arith.mulf %270, %272 : vector<16x256xf32>
    %c0_203 = arith.constant 0 : index
    %c0_204 = arith.constant 0 : index
    %274 = vector.load %arg10[%c0_203, %c0_204] : memref<16x1xf32, #tpu.memory_space<vmem>>, vector<16x1xf32>
    %275 = vector.broadcast %274 : vector<16x1xf32> to vector<16x256xf32>
    %276 = arith.addf %273, %275 : vector<16x256xf32>
    %cst_205 = arith.constant 0.000000e+00 : f32
    %277 = vector.broadcast %cst_205 : f32 to vector<16x256xf32>
    %278 = arith.maximumf %276, %277 : vector<16x256xf32>
    %279 = arith.truncf %278 : vector<16x256xf32> to vector<16x256xbf16>
    %c0_206 = arith.constant 0 : index
    %c0_207 = arith.constant 0 : index
    %c0_208 = arith.constant 0 : index
    %280 = vector.load %arg11[%c0_206, %c0_207, %c0_208] : memref<1x16x256xbf16, #tpu.memory_space<vmem>>, vector<1x16x256xbf16>
    %281 = vector.shape_cast %280 : vector<1x16x256xbf16> to vector<16x256xbf16>
    %282 = vector.shape_cast %279 : vector<16x256xbf16> to vector<1x16x256xbf16>
    tpu.vector_store %arg11[%c0_206, %c0_207, %c0_208], %282 {strides = array<i32>} : memref<1x16x256xbf16, #tpu.memory_space<vmem>>, vector<1x16x256xbf16>,
    return
  }
  func.func @transform_0(%arg0: i32) -> (i32, i32) {
    %c0_i32 = arith.constant 0 : i32
    %c0_i32_0 = arith.constant 0 : i32
    %c0_i32_1 = arith.constant 0 : i32
    return %c0_i32, %c0_i32_0 : i32, i32
  }
  func.func @transform_1(%arg0: i32) -> (i32, i32) {
    %c0_i32 = arith.constant 0 : i32
    %c0_i32_0 = arith.constant 0 : i32
    %c0_i32_1 = arith.constant 0 : i32
    return %c0_i32, %c0_i32_0 : i32, i32
  }
  func.func @transform_2(%arg0: i32) -> (i32, i32, i32) {
    %c0_i32 = arith.constant 0 : i32
    %c0_i32_0 = arith.constant 0 : i32
    %c0_i32_1 = arith.constant 0 : i32
    return %arg0, %c0_i32, %c0_i32_0 : i32, i32, i32
  }
  func.func @transform_3(%arg0: i32) -> (i32, i32, i32) {
    %c0_i32 = arith.constant 0 : i32
    %c0_i32_0 = arith.constant 0 : i32
    %c0_i32_1 = arith.constant 0 : i32
    return %arg0, %c0_i32, %c0_i32_0 : i32, i32, i32
  }
  func.func @transform_4(%arg0: i32) -> (i32, i32) {
    %c0_i32 = arith.constant 0 : i32
    %c0_i32_0 = arith.constant 0 : i32
    %c0_i32_1 = arith.constant 0 : i32
    return %c0_i32, %c0_i32_0 : i32, i32
  }
  func.func @transform_5(%arg0: i32) -> (i32, i32) {
    %c0_i32 = arith.constant 0 : i32
    %c0_i32_0 = arith.constant 0 : i32
    %c0_i32_1 = arith.constant 0 : i32
    return %c0_i32, %c0_i32_0 : i32, i32
  }
  func.func @transform_6(%arg0: i32) -> (i32, i32) {
    %c0_i32 = arith.constant 0 : i32
    %c0_i32_0 = arith.constant 0 : i32
    %c0_i32_1 = arith.constant 0 : i32
    return %c0_i32, %c0_i32_0 : i32, i32
  }
  func.func @transform_7(%arg0: i32) -> (i32, i32) {
    %c0_i32 = arith.constant 0 : i32
    %c0_i32_0 = arith.constant 0 : i32
    %c0_i32_1 = arith.constant 0 : i32
    return %c0_i32, %c0_i32_0 : i32, i32
  }
  func.func @transform_8(%arg0: i32) -> (i32, i32) {
    %c0_i32 = arith.constant 0 : i32
    %c0_i32_0 = arith.constant 0 : i32
    %c0_i32_1 = arith.constant 0 : i32
    return %c0_i32, %c0_i32_0 : i32, i32
  }
  func.func @transform_9(%arg0: i32) -> (i32, i32) {
    %c0_i32 = arith.constant 0 : i32
    %c0_i32_0 = arith.constant 0 : i32
    %c0_i32_1 = arith.constant 0 : i32
    return %c0_i32, %c0_i32_0 : i32, i32
  }
  func.func @transform_10(%arg0: i32) -> (i32, i32, i32) {
    %c0_i32 = arith.constant 0 : i32
    %c0_i32_0 = arith.constant 0 : i32
    %c0_i32_1 = arith.constant 0 : i32
    return %arg0, %c0_i32, %c0_i32_0 : i32, i32, i32
  }
}

</mosaic_0001>

<bundles_post_ra>
// kernel: up_forward.1
= control target key start
LH: loop header
LB: loop body
LE: loop exit
PB: predicated region body
PF: predicated region fallthrough
CT: control target
= control target key end

     0   :  { %s2334_s13 = smov 0   ;;  %s3249_s0 = inlined_call_operand.vmem [shape: bf16[64,256], index: 0, kind: input, shape index: {}]   ;;  %s3250_s1 = inlined_call_operand.vmem [shape: f32[9,256], index: 1, kind: input, shape index: {}]   ;;  %s3251_s2 = inlined_call_operand.vmem [shape: bf16[2,16,64], index: 2, kind: input, shape index: {}]   ;;  %s3252_s3 = inlined_call_operand.vmem [shape: bf16[2,16,256], index: 3, kind: input, shape index: {}]   ;;  %s3253_s4 = inlined_call_operand.vmem [shape: bf16[16,288], index: 4, kind: input, shape index: {}]   ;;  %s3254_s5 = inlined_call_operand.vmem [shape: f32[16,1], index: 5, kind: input, shape index: {}]   ;;  %s3255_s6 = inlined_call_operand.vmem [shape: f32[16,1], index: 6, kind: input, shape index: {}]   ;;  %s3256_s7 = inlined_call_operand.vmem [shape: bf16[16,144], index: 7, kind: input, shape index: {}]   ;;  %s3257_s8 = inlined_call_operand.vmem [shape: f32[16,1], index: 8, kind: input, shape index: {}]   ;;  %s3258_s9 = inlined_call_operand.vmem [shape: f32[16,1], index: 9, kind: input, shape index: {}]   ;;  %s3259_s10 = inlined_call_operand.vmem [shape: bf16[2,16,256], index: 10, kind: output, shape index: {}]  }
   0x1 LB: > { %s2156_s14 = sadd.s32 4294967295, %s2268_s13   ;;  %p2160_p0 = scmp.ge.s32.totalorder %s2268_s13, 1  ;;  %s2268_s13 = sphi %s2334_s13, %s20_s13  }
   0x2   : > { %p322_p1 = scmp.lt.s32.totalorder %s2268_s13, 3 }
   0x4   : > { %p323_p2 = pnand %p2160_p0, %p322_p1 }
   0x5   : > { %v2239_v0 = vld [vmem:[%s3249_s0 + $0x4] ss:$8 sps:$4 sm:$0xff] (!%p323_p2)   ;;  %p365_p3 = scmp.lt.s32.totalorder (!%p323_p2), %s2156_s14, 1  ;;  %v509_v1 = vlaneseq (!%p323_p2)  ;;  %v2241_v2 = vld [vmem:[%s3249_s0] ss:$8 sps:$4 sm:$0xff] (!%p323_p2)   ;;  %v2270_v3 = vmov (!%p323_p2), 0  }
   0x6   : > { %326 = sbr.rel (%p323_p2) target bundleno = 1028 (0x404), region = 60  ;;  %488 = vmatprep.mubr.bf16.mxu0 (!%p323_p2), %v2270_v3  ;;  %2238 = vset.pattern.permute.xlu1 (!%p323_p2), %v2270_v3  ;;  %v2242_v4 = vld [vmem:[%s3249_s0 + $0x14] ss:$8 sps:$4 sm:$0xff] (!%p323_p2)   ;;  %v2244_v5 = vld [vmem:[%s3249_s0 + $0x10] ss:$8 sps:$4 sm:$0xff] (!%p323_p2)   ;;  %vm452_vm11 = vcmask (!%p323_p2), 523264  }
   0x7   : > { %456 = vmatprep.subr.bf16.mxu0 (!%p323_p2), %v2239_v0  ;;  %2237 = vset.pattern.permute.xlu0 (!%p323_p2), %v2270_v3  ;;  %v510_v6 = vshrl.u32 (!%p323_p2), %v509_v1, 7  ;;  %v2245_v7 = vld [vmem:[%s3249_s0 + $0x24] ss:$8 sps:$4 sm:$0xff] (!%p323_p2)   ;;  %v2247_v8 = vld [vmem:[%s3249_s0 + $0x20] ss:$8 sps:$4 sm:$0xff] (!%p323_p2)   ;;  %s2272_s23 = smov (!%p323_p2), 112  }
   0x8   : > { %457 = vmatpush1.bf16.msra.mxu0 (!%p323_p2), %v2241_v2  ;;  %v506_v9 = vld [vmem:[%s3250_s1] ss:$8 sm:$0x3] (!%p323_p2)  ;;  %v2248_v14 = vld [vmem:[%s3249_s0 + $0x34] ss:$8 sps:$4 sm:$0xff] (!%p323_p2)   ;;  %s2273_s29 = smov (!%p323_p2), 113  }
   0x9   : > { %458 = vmatprep.subr.bf16.mxu0 (!%p323_p2), %v2242_v4  ;;  %v2375_v10 = vsub.s32 (!%p323_p2), 0, %v510_v6  ;;  %vm507_vm0 = vcmp.gt.f32.partialorder (!%p323_p2), %v506_v9, 0.0  ;;  %v2384_v12 = vsub.s32 (!%p323_p2), 1, %v510_v6  ;;  %v2179_v16 = vld [vmem:[%s3250_s1 + $0x1] ss:$8 sm:$0x3] (!%p323_p2) }
   0xa   : > { %v508_v15 = vsel (!%p323_p2), %vm507_vm0, 1, %v2270_v3  ;;  %v2250_v17 = vld [vmem:[%s3249_s0 + $0x30] ss:$8 sps:$4 sm:$0xff] (!%p323_p2)   ;;  %vm614_vm1 = vcmp.gt.f32.partialorder (!%p323_p2), %v2179_v16, 0.0  ;;  %v2414_v26 = vsub.s32 (!%p323_p2), 4, %v510_v6  ;;  %s2274_s16 = smov (!%p323_p2), 127  }
   0xb   : > { %v512_v18 = vrot.slane (!%p323_p2), %v508_v15, %v2375_v10  ;;  %v516_v19 = vrot.slane (!%p323_p2), %v508_v15, %v2384_v12  ;;  %v560_v20 = vld [vmem:[%s3250_s1] ss:$8 sm:$0x3] (!%p323_p2)  ;;  %v615_v21 = vsel (!%p323_p2), %vm614_vm1, 1, %v2270_v3  ;;  %s2275_s22 = smov (!%p323_p2), 1   ;;  %s2276_s27 = smov (!%p323_p2), 15  }
   0xc   : > { %459 = vmatpush1.bf16.msra.mxu0 (!%p323_p2), %v2244_v5  ;;  %vm561_vm2 = vcmp.gt.f32.partialorder (!%p323_p2), %v560_v20, 0.0  ;;  %v2180_v22 = vld [vmem:[%s3250_s1 + $0x1] ss:$8 sm:$0x3] (!%p323_p2)  ;;  %v619_v23 = vrot.slane (!%p323_p2), %v615_v21, %v2375_v10  ;;  %v623_v24 = vrot.slane (!%p323_p2), %v615_v21, %v2384_v12  ;;  %s2277_s28 = smov (!%p323_p2), 16   ;;  %s2278_s30 = smov (!%p323_p2), 17  }
   0xd   : > { %s3343_s14 = smov (!%p365_p3, %s2156_s14), 1  ;;  %460 = vmatprep.subr.bf16.mxu0 %v2245_v7  ;;  %vm517_vm3 = vcmp.eq.s32.totalorder %v512_v18, 1  ;;  %vm518_vm4 = vcmp.eq.s32.totalorder %v516_v19, 1  ;;  %v2181_v25 = vld [vmem:[%s3250_s1 + $0x2] ss:$8 sm:$0x3] }
   0xe   : > { %s2211_s25 = sshll.u32 %s3343_s14, 3  ;;  %s2212_s26 = sshll.u32 %s3343_s14, 4  ;;  %vm519_vm5 = vmpackc.low %vm518_vm4, %vm517_vm3  ;;  %v562_v27 = vsel %vm561_vm2, 1, %v2270_v3  ;;  %vm668_vm6 = vcmp.gt.f32.partialorder %v2180_v22, 0.0  ;;  %vm721_vm7 = vcmp.gt.f32.partialorder %v2181_v25, 0.0  ;;  %vm2418_vm8 = vcmp.eq.s32.totalorder %v619_v23, 1 }
   0xf   : > { %s374_s11 = scalar_lea.vmem %s3252_s3, %s2212_s26  ;;  %s2380_s18 = scalar_lea.vmem %s3251_s2, %s2211_s25  ;;  %v520_v28 = vsel %vm519_vm5, 65537, %v2270_v3  ;;  %vm2422_vm9 = vcmp.eq.s32.totalorder %v623_v24, 1  ;;  %v566_v31 = vrot.slane %v562_v27, %v2375_v10  ;;  %v570_v34 = vrot.slane %v562_v27, %v2384_v12  ;;  %v2182_v36 = vld [vmem:[%s3250_s1 + $0x2] ss:$8 sm:$0x3] }
  0x10   : > { %v2382_v11 = vld [vmem:[%s374_s11] ss:$8 sps:$4 sm:$0xff]   ;;  %v2386_v13 = vld [vmem:[%s374_s11 + $0x4] ss:$8 sps:$4 sm:$0xff]   ;;  %461 = vmatpush1.bf16.msra.mxu0 %v2247_v8  ;;  %v524_v33 = vrot.slane %v520_v28, %v2375_v10  ;;  %vm626_vm10 = vmpackc.low %vm2422_vm9, %vm2418_vm8  ;;  %v669_v35 = vsel %vm668_vm6, 1, %v2270_v3  ;;  %v528_v41 = vrot.slane %v520_v28, %v2414_v26  ;;  %v722_v43 = vsel %vm721_vm7, 1, %v2270_v3  ;;  %s379_s11 = scalar_lea.vmem %s3259_s10, %s2212_s26 }
  0x11   : > { %395 = vst [vmem:[#allocation2 + $0x8] sm:$0xff] %v2382_v11  ;;  %396 = vst [vmem:[#allocation2 + $0x10] sm:$0xff] %v2386_v13  ;;  %462 = vmatprep.subr.bf16.mxu0 %v2248_v14  ;;  %v2254_v32 = vld [vmem:[%s2380_s18] sm:$0xff]   ;;  %vm2438_vm12 = vcmp.eq.s32.totalorder %v566_v31, 1  ;;  %v673_v38 = vrot.slane %v669_v35, %v2375_v10  ;;  %v677_v39 = vrot.slane %v669_v35, %v2384_v12  ;;  %s2271_s18 = smov 111   ;;  %v627_v42 = vsel %vm626_vm10, 65537, %v2270_v3 }
  0x12   : > { %v2183_v40 = vld [vmem:[%s3250_s1 + $0x3] ss:$8 sm:$0x3]  ;;  %529 = vrot.lane.b32.xlu0 %v524_v33, %s2271_s18  ;;  %vm572_vm13 = vcmp.eq.s32.totalorder %v570_v34, 1  ;;  %v726_v46 = vrot.slane %v722_v43, %v2375_v10  ;;  %v730_v47 = vrot.slane %v722_v43, %v2384_v12  ;;  %vm775_vm2 = vcmp.gt.f32.partialorder %v2182_v36, 0.0 }
  0x13   : > { %vm573_vm14 = vmpackc.low %vm572_vm13, %vm2438_vm12  ;;  %vm2454_vm15 = vcmp.eq.s32.totalorder %v673_v38, 1  ;;  %vm2458_vm0 = vcmp.eq.s32.totalorder %v677_v39, 1  ;;  %v2184_v48 = vld [vmem:[%s3250_s1 + $0x3] ss:$8 sm:$0x3]  ;;  %vm828_vm3 = vcmp.gt.f32.partialorder %v2183_v40, 0.0  ;;  %v631_v50 = vrot.slane %v627_v42, %v2375_v10 }
  0x14   : > { %463 = vmatpush1.bf16.msra.mxu0 %v2250_v17  ;;  %v574_v49 = vsel %vm573_vm14, 65537, %v2270_v3  ;;  %vm680_vm1 = vmpackc.low %vm2458_vm0, %vm2454_vm15  ;;  %vm2475_vm4 = vcmp.eq.s32.totalorder %v726_v46, 1  ;;  %vm2482_vm5 = vcmp.eq.s32.totalorder %v730_v47, 1  ;;  %v776_v55 = vsel %vm775_vm2, 1, %v2270_v3  ;;  %v503_v40 = vld [vmem:[#allocation2] sm:$0xff] }
  0x15   : > { %v578_v51 = vrot.slane %v574_v49, %v2375_v10  ;;  %v582_v53 = vrot.slane %v574_v49, %v2414_v26  ;;  %vm882_vm6 = vcmp.gt.f32.partialorder %v2184_v48, 0.0  ;;  %v681_v56 = vsel %vm680_vm1, 65537, %v2270_v3  ;;  %vm733_vm7 = vmpackc.low %vm2482_vm5, %vm2475_vm4  ;;  %v2185_v60 = vld [vmem:[%s3250_s1 + $0x5] ss:$8 sm:$0x3] }
  0x16   : > { %531 = vrot.lane.b32.xlu0 %v528_v41, %s2271_s18  ;;  %v780_v57 = vrot.slane %v776_v55, %v2375_v10  ;;  %v784_v58 = vrot.slane %v776_v55, %v2384_v12  ;;  %v829_v59 = vsel %vm828_vm3, 1, %v2270_v3  ;;  %v685_v1 = vrot.slane %v681_v56, %v2375_v10  ;;  %v2186_v6 = vld [vmem:[%s3250_s1 + $0x5] ss:$8 sm:$0x3] }
  0x17   : > { %2178 = vmatmul.mubr.msk.bf16.vlgmr.msra.gmra.mrb[0].mxu0 %vm452_vm11, %v2254_v32  ;;  %583 = vrot.lane.b32.xlu1 %v578_v51, %s2271_s18  ;;  %v833_v63 = vrot.slane %v829_v59, %v2375_v10  ;;  %v837_v0 = vrot.slane %v829_v59, %v2384_v12  ;;  %v883_v2 = vsel %vm882_vm6, 1, %v2270_v3  ;;  %v734_v4 = vsel %vm733_vm7, 65537, %v2270_v3  ;;  %v2187_v19 = vld [vmem:[%s3250_s1 + $0x6] ss:$8 sm:$0x3] }
  0x18   : > { %1492 = vmatprep.mubr.bf16.mxu0 %v2270_v3  ;;  %vm2499_vm8 = vcmp.eq.s32.totalorder %v780_v57, 1  ;;  %vm2503_vm9 = vcmp.eq.s32.totalorder %v784_v58, 1  ;;  %v635_v5 = vrot.slane %v627_v42, %v2414_v26  ;;  %vm943_vm10 = vcmp.gt.f32.partialorder %v2185_v60, 0.0  ;;  %v2188_v29 = vld [vmem:[%s3250_s1 + $0x6] ss:$8 sm:$0x3] }
  0x19   : > { %vm787_vm11 = vmpackc.low %vm2503_vm9, %vm2499_vm8  ;;  %vm2522_vm12 = vcmp.eq.s32.totalorder %v833_v63, 1  ;;  %vm2526_vm13 = vcmp.eq.s32.totalorder %v837_v0, 1  ;;  %v887_v9 = vrot.slane %v883_v2, %v2375_v10  ;;  %v891_v14 = vrot.slane %v883_v2, %v2384_v12  ;;  %v2189_v38 = vld [vmem:[%s3250_s1 + $0x7] ss:$8 sm:$0x3] }
  0x1a   : > { %636 = vrot.lane.b32.xlu0 %v631_v50, %s2272_s23  ;;  %v738_v15 = vrot.slane %v734_v4, %v2375_v10  ;;  %v944_v16 = vsel %vm943_vm10, 1, %v2270_v3  ;;  %v788_v17 = vsel %vm787_vm11, 65537, %v2270_v3  ;;  %v689_v18 = vrot.slane %v681_v56, %v2414_v26  ;;  %vm840_vm15 = vmpackc.low %vm2526_vm13, %vm2522_vm12  ;;  %v2191_v47 = vld [vmem:[%s3250_s1 + $0x10] ss:$8 sm:$0x3] }
  0x1b   : > { %585 = vrot.lane.b32.xlu1 %v582_v53, %s2271_s18  ;;  %vm995_vm14 = vcmp.gt.f32.partialorder %v2186_v6, 0.0  ;;  %vm2545_vm0 = vcmp.eq.s32.totalorder %v887_v9, 1  ;;  %vm2549_vm1 = vcmp.eq.s32.totalorder %v891_v14, 1  ;;  %v948_v22 = vrot.slane %v944_v16, %v2375_v10  ;;  %v2190_v56 = vld [vmem:[%s3250_s1 + $0x7] ss:$8 sm:$0x3] }
  0x1c   : > { %v952_v23 = vrot.slane %v944_v16, %v2384_v12  ;;  %v792_v24 = vrot.slane %v788_v17, %v2375_v10  ;;  %v996_v25 = vsel %vm995_vm14, 1, %v2270_v3  ;;  %v841_v27 = vsel %vm840_vm15, 65537, %v2270_v3  ;;  %vm894_vm3 = vmpackc.low %vm2549_vm1, %vm2545_vm0 }
  0x1d   : > { %v742_v28 = vrot.slane %v734_v4, %v2414_v26  ;;  %vm1048_vm2 = vcmp.gt.f32.partialorder %v2187_v19, 0.0  ;;  %vm2568_vm4 = vcmp.eq.s32.totalorder %v948_v22, 1  ;;  %v1000_v32 = vrot.slane %v996_v25, %v2375_v10 }
  0x1e   : > { %690 = vrot.lane.b32.xlu0 %v685_v1, %s2272_s23  ;;  %vm2572_vm5 = vcmp.eq.s32.totalorder %v952_v23, 1  ;;  %v1004_v33 = vrot.slane %v996_v25, %v2384_v12  ;;  %v845_v34 = vrot.slane %v841_v27, %v2375_v10  ;;  %v1049_v35 = vsel %vm1048_vm2, 1, %v2270_v3  ;;  %v2192_v1 = vld [vmem:[%s3250_s1 + $0x10] ss:$8 sm:$0x3] }
  0x1f   : > { %638 = vrot.lane.b32.xlu1 %v635_v5, %s2272_s23  ;;  %v796_v36 = vrot.slane %v788_v17, %v2414_v26  ;;  %v895_v37 = vsel %vm894_vm3, 65537, %v2270_v3  ;;  %vm1100_vm6 = vcmp.gt.f32.partialorder %v2188_v29, 0.0  ;;  %vm955_vm7 = vmpackc.low %vm2572_vm5, %vm2568_vm4  ;;  %vm2591_vm8 = vcmp.eq.s32.totalorder %v1000_v32, 1 }
  0x20   : > { %vm2595_vm9 = vcmp.eq.s32.totalorder %v1004_v33, 1  ;;  %v1053_v41 = vrot.slane %v1049_v35, %v2375_v10  ;;  %v1057_v42 = vrot.slane %v1049_v35, %v2384_v12  ;;  %v899_v43 = vrot.slane %v895_v37, %v2375_v10 }
  0x21   : > { %v1101_v44 = vsel %vm1100_vm6, 1, %v2270_v3  ;;  %v849_v45 = vrot.slane %v841_v27, %v2414_v26  ;;  %v956_v46 = vsel %vm955_vm7, 65537, %v2270_v3  ;;  %vm1153_vm10 = vcmp.gt.f32.partialorder %v2189_v38, 0.0  ;;  %vm1007_vm11 = vmpackc.low %vm2595_vm9, %vm2591_vm8 }
  0x22   : > { %743 = vrot.lane.b32.xlu0 %v738_v15, %s2273_s29  ;;  %vm2614_vm12 = vcmp.eq.s32.totalorder %v1053_v41, 1  ;;  %vm2618_vm13 = vcmp.eq.s32.totalorder %v1057_v42, 1  ;;  %v1105_v50 = vrot.slane %v1101_v44, %v2375_v10  ;;  %v1109_v51 = vrot.slane %v1101_v44, %v2384_v12 }
  0x23   : > { %692 = vrot.lane.b32.xlu1 %v689_v18, %s2272_s23  ;;  %v960_v52 = vrot.slane %v956_v46, %v2375_v10  ;;  %v1154_v53 = vsel %vm1153_vm10, 1, %v2270_v3  ;;  %v903_v54 = vrot.slane %v895_v37, %v2414_v26  ;;  %v1008_v55 = vsel %vm1007_vm11, 65537, %v2270_v3  ;;  %vm1060_vm15 = vmpackc.low %vm2618_vm13, %vm2614_vm12 }
  0x24   : > { %vm1258_vm14 = vcmp.gt.f32.partialorder %v2191_v47, 0.0  ;;  %vm2637_vm0 = vcmp.eq.s32.totalorder %v1105_v50, 1  ;;  %vm2641_vm1 = vcmp.eq.s32.totalorder %v1109_v51, 1  ;;  %v1158_v59 = vrot.slane %v1154_v53, %v2375_v10 }
  0x25   : > { %v1162_v60 = vrot.slane %v1154_v53, %v2384_v12  ;;  %v1012_v61 = vrot.slane %v1008_v55, %v2375_v10  ;;  %v1259_v62 = vsel %vm1258_vm14, 1, %v2270_v3  ;;  %v964_v63 = vrot.slane %v956_v46, %v2414_v26  ;;  %vm1112_vm3 = vmpackc.low %vm2641_vm1, %vm2637_vm0 }
  0x26   : > { %797 = vrot.lane.b32.xlu0 %v792_v24, %s2273_s29  ;;  %v1061_v0 = vsel %vm1060_vm15, 65537, %v2270_v3  ;;  %vm1205_vm2 = vcmp.gt.f32.partialorder %v2190_v56, 0.0  ;;  %vm2660_vm4 = vcmp.eq.s32.totalorder %v1158_v59, 1  ;;  %v1263_v5 = vrot.slane %v1259_v62, %v2375_v10 }
  0x27   : > { %745 = vrot.lane.b32.xlu1 %v742_v28, %s2273_s29  ;;  %vm2664_vm5 = vcmp.eq.s32.totalorder %v1162_v60, 1  ;;  %v1267_v6 = vrot.slane %v1259_v62, %v2384_v12  ;;  %v1065_v7 = vrot.slane %v1061_v0, %v2375_v10  ;;  %v1206_v8 = vsel %vm1205_vm2, 1, %v2270_v3 }
  0x28   : > { %v1016_v9 = vrot.slane %v1008_v55, %v2414_v26  ;;  %v1113_v14 = vsel %vm1112_vm3, 65537, %v2270_v3  ;;  %vm1310_vm6 = vcmp.gt.f32.partialorder %v2192_v1, 0.0  ;;  %vm1165_vm7 = vmpackc.low %vm2664_vm5, %vm2660_vm4  ;;  %vm2680_vm8 = vcmp.eq.s32.totalorder %v1263_v5, 1 }
  0x29   : > { %vm2684_vm9 = vcmp.eq.s32.totalorder %v1267_v6, 1  ;;  %v1210_v17 = vrot.slane %v1206_v8, %v2375_v10  ;;  %v1214_v18 = vrot.slane %v1206_v8, %v2384_v12  ;;  %v1117_v19 = vrot.slane %v1113_v14, %v2375_v10 }
  0x2a   : > { %850 = vrot.lane.b32.xlu0 %v845_v34, %s2274_s16  ;;  %v1311_v20 = vsel %vm1310_vm6, 1, %v2270_v3  ;;  %v1069_v21 = vrot.slane %v1061_v0, %v2414_v26  ;;  %v1166_v22 = vsel %vm1165_vm7, 65537, %v2270_v3  ;;  %vm1270_vm10 = vmpackc.low %vm2684_vm9, %vm2680_vm8  ;;  %v1121_v29 = vrot.slane %v1113_v14, %v2414_v26 }
  0x2b   : > { %799 = vrot.lane.b32.xlu1 %v796_v36, %s2273_s29  ;;  %vm2700_vm11 = vcmp.eq.s32.totalorder %v1210_v17, 1  ;;  %vm2704_vm12 = vcmp.eq.s32.totalorder %v1214_v18, 1  ;;  %v1315_v25 = vrot.slane %v1311_v20, %v2375_v10  ;;  %v1319_v27 = vrot.slane %v1311_v20, %v2384_v12 }
  0x2c   : > { %v1170_v28 = vrot.slane %v1166_v22, %v2375_v10  ;;  %v1271_v30 = vsel %vm1270_vm10, 65537, %v2270_v3  ;;  %vm1217_vm13 = vmpackc.low %vm2704_vm12, %vm2700_vm11  ;;  %v1174_v32 = vrot.slane %v1166_v22, %v2414_v26  ;;  %vm533_vm8 = vcmask 908288  }
  0x2d   : > { %vm1320_vm14 = vcmp.eq.s32.totalorder %v1315_v25, 1  ;;  %vm1321_vm15 = vcmp.eq.s32.totalorder %v1319_v27, 1  ;;  %v1275_v31 = vrot.slane %v1271_v30, %v2375_v10  ;;  %v1218_v33 = vsel %vm1217_vm13, 65537, %v2270_v3 }
  0x2e   : > { %904 = vrot.lane.b32.xlu0 %v899_v43, %s2274_s16  ;;  %vm1322_vm0 = vmpackc.low %vm1321_vm15, %vm1320_vm14  ;;  %v1222_v34 = vrot.slane %v1218_v33, %v2375_v10  ;;  %v1279_v35 = vrot.slane %v1271_v30, %v2414_v26  ;;  %v1226_v38 = vrot.slane %v1218_v33, %v2414_v26  ;;  %vm640_vm11 = vcmask 916480  }
  0x2f   : > { %852 = vrot.lane.b32.xlu1 %v849_v45, %s2274_s16  ;;  %v1323_v36 = vsel %vm1322_vm0, 65537, %v2270_v3  ;;  %v557_v45 = vld [vmem:[#allocation3] sm:$0xff]  ;;  %vm747_vm14 = vcmask 924672  }
  0x30   : > { %v1327_v37 = vrot.slane %v1323_v36, %v2375_v10  ;;  %v1331_v39 = vrot.slane %v1323_v36, %v2414_v26 }
  0x32   : > { %965 = vrot.lane.b32.xlu0 %v960_v52, %s2275_s22 }
  0x33   : > { %906 = vrot.lane.b32.xlu1 %v903_v54, %s2274_s16 }
  0x36   : > { %1017 = vrot.lane.b32.xlu0 %v1012_v61, %s2275_s22 }
  0x37   : > { %967 = vrot.lane.b32.xlu1 %v964_v63, %s2275_s22 }
  0x3a   : > { %1070 = vrot.lane.b32.xlu0 %v1065_v7, %s2276_s27 }
  0x3b   : > { %1019 = vrot.lane.b32.xlu1 %v1016_v9, %s2275_s22 }
  0x3e   : > { %1122 = vrot.lane.b32.xlu0 %v1117_v19, %s2276_s27 }
  0x3f   : > { %1072 = vrot.lane.b32.xlu1 %v1069_v21, %s2276_s27 }
  0x42   : > { %1175 = vrot.lane.b32.xlu0 %v1170_v28, %s2277_s28 }
  0x43   : > { %1124 = vrot.lane.b32.xlu1 %v1121_v29, %s2276_s27 }
  0x46   : > { %1280 = vrot.lane.b32.xlu0 %v1275_v31, %s2278_s30 }
  0x47   : > { %1177 = vrot.lane.b32.xlu1 %v1174_v32, %s2277_s28 }
  0x4a   : > { %1227 = vrot.lane.b32.xlu0 %v1222_v34, %s2277_s28 }
  0x4b   : > { %1282 = vrot.lane.b32.xlu1 %v1279_v35, %s2278_s30 }
  0x4e   : > { %1332 = vrot.lane.b32.xlu0 %v1327_v37, %s2278_s30 }
  0x4f   : > { %1229 = vrot.lane.b32.xlu1 %v1226_v38, %s2277_s28 }
  0x53   : > { %1334 = vrot.lane.b32.xlu1 %v1331_v39, %s2278_s30 }
  0x84   : > { %v530_v41 = vpop.permute.xlu0 %529 }
  0x85   : > { %vm535_vm1 = vcmp.ne.s16.totalorder %v530_v41, 0 }
  0x86   : > { %v538_v42 = vsel %vm535_vm1, %v503_v40, 0 }
  0x87   : > { %544 = vrot.lane.b32.xlu0 %v538_v42, %s2278_s30 }
  0x88   : > { %v532_v43 = vpop.permute.xlu0 %531 }
  0x89   : > { %v2738_v44 = vpop.permute.xlu1 %583  ;;  %vm537_vm2 = vcmp.ne.s16.totalorder %v532_v43, 0  ;;  %v534_v60 = vsel %vm533_vm8, %v530_v41, %v532_v43 }
  0x8a   : > { %v540_v46 = vsel %vm537_vm2, %v2386_v13, 0  ;;  %vm588_vm3 = vcmp.ne.s16.totalorder %v2738_v44, 0  ;;  %vm536_vm13 = vcmp.ne.s16.totalorder %v534_v60, 0  ;;  %vm854_vm2 = vcmask 1039360  }
  0x8b   : > { %548 = vrot.lane.b32.xlu1 %v540_v46, %s2278_s30  ;;  %v591_v48 = vsel %vm588_vm3, %v557_v45, 0  ;;  %v539_v4 = vsel %vm536_vm13, %v2382_v11, 0 }
  0x8c   : > { %v637_v47 = vpop.permute.xlu0 %636 }
  0x8d   : > { %v2743_v49 = vpop.permute.xlu1 %585  ;;  %vm642_vm4 = vcmp.ne.s16.totalorder %v637_v47, 0 }
  0x8e   : > { %v645_v50 = vsel %vm642_vm4, %v503_v40, 0  ;;  %v587_v27 = vsel %vm533_vm8, %v2738_v44, %v2743_v49 }
  0x8f   : > { %651 = vrot.lane.b32.xlu0 %v645_v50, %s2277_s28  ;;  %597 = vrot.lane.b32.xlu1 %v591_v48, %s2278_s30  ;;  %v940_v50 = vld [vmem:[#allocation2 + $0x18] sm:$0xff] }
  0x90   : > { %v2747_v51 = vpop.permute.xlu0 %690 }
  0x91   : > { %v639_v52 = vpop.permute.xlu1 %638  ;;  %vm695_vm6 = vcmp.ne.s16.totalorder %v2747_v51, 0 }
  0x92   : > { %vm644_vm5 = vcmp.ne.s16.totalorder %v639_v52, 0  ;;  %v698_v56 = vsel %vm695_vm6, %v557_v45, 0  ;;  %v641_v2 = vsel %vm640_vm11, %v637_v47, %v639_v52  ;;  %vm589_vm6 = vcmp.ne.s16.totalorder %v587_v27, 0 }
  0x93   : > { %v647_v53 = vsel %vm644_vm5, %v2386_v13, 0  ;;  %vm643_vm15 = vcmp.ne.s16.totalorder %v641_v2, 0  ;;  %vm871_vm5 = vcmask 7168  }
  0x94   : > { %v744_v54 = vpop.permute.xlu0 %743  ;;  %655 = vrot.lane.b32.xlu1 %v647_v53, %s2277_s28  ;;  %v646_v9 = vsel %vm643_vm15, %v2382_v11, 0  ;;  %v2835_v53 = vld [vmem:[#allocation3 + $0x18] sm:$0xff] }
  0x95   : > { %vm749_vm7 = vcmp.ne.s16.totalorder %v744_v54, 0  ;;  %v2752_v55 = vpop.permute.xlu1 %692 }
  0x96   : > { %v752_v57 = vsel %vm749_vm7, %v503_v40, 0  ;;  %vm590_vm7 = vcmp.ne.s16.totalorder %v2743_v49, 0  ;;  %v694_v36 = vsel %vm640_vm11, %v2747_v51, %v2752_v55  ;;  %vm697_vm13 = vcmp.ne.s16.totalorder %v2752_v55, 0 }
  0x97   : > { %758 = vrot.lane.b32.xlu0 %v752_v57, %s2276_s27 }
  0x98   : > { %v2755_v58 = vpop.permute.xlu0 %797  ;;  %704 = vrot.lane.b32.xlu1 %v698_v56, %s2277_s28 }
  0x99   : > { %v746_v59 = vpop.permute.xlu1 %745  ;;  %vm802_vm10 = vcmp.ne.s16.totalorder %v2755_v58, 0 }
  0x9a   : > { %vm751_vm9 = vcmp.ne.s16.totalorder %v746_v59, 0  ;;  %v805_v0 = vsel %vm802_vm10, %v557_v45, 0  ;;  %v748_v7 = vsel %vm747_vm14, %v744_v54, %v746_v59  ;;  %vm696_vm10 = vcmp.ne.s16.totalorder %v694_v36, 0  ;;  %v1546_v36 = vld [vmem:[%s3250_s1] ss:$8 sm:$0x3] }
  0x9b   : > { %v754_v61 = vsel %vm751_vm9, %v2386_v13, 0  ;;  %vm750_vm3 = vcmp.ne.s16.totalorder %v748_v7, 0 }
  0x9c   : > { %v851_v62 = vpop.permute.xlu0 %850  ;;  %762 = vrot.lane.b32.xlu1 %v754_v61, %s2276_s27  ;;  %v753_v16 = vsel %vm750_vm3, %v2382_v11, 0 }
  0x9d   : > { %vm856_vm12 = vcmp.ne.s16.totalorder %v851_v62, 0  ;;  %v2762_v63 = vpop.permute.xlu1 %799 }
  0x9e   : > { %v859_v1 = vsel %vm856_vm12, %v503_v40, 0  ;;  %v801_v41 = vsel %vm747_vm14, %v2755_v58, %v2762_v63  ;;  %vm804_vm3 = vcmp.ne.s16.totalorder %v2762_v63, 0 }
  0x9f   : > { %865 = vrot.lane.b32.xlu0 %v859_v1, %s2275_s22  ;;  %vm803_vm12 = vcmp.ne.s16.totalorder %v801_v41, 0 }
  0xa0   : > { %811 = vrot.lane.b32.xlu1 %v805_v0, %s2276_s27  ;;  %v905_v6 = vpop.permute.xlu0 %904 }
  0xa1   : > { %v853_v5 = vpop.permute.xlu1 %852  ;;  %vm909_vm1 = vcmp.ne.s16.totalorder %v905_v6, 0 }
  0xa2   : > { %vm858_vm0 = vcmp.ne.s16.totalorder %v853_v5, 0  ;;  %v912_v14 = vsel %vm909_vm1, %v557_v45, 0  ;;  %v855_v15 = vsel %vm854_vm2, %v851_v62, %v853_v5 }
  0xa3   : > { %546 = vrot.lane.b32.xlu0 %v539_v4, %s2278_s30  ;;  %v861_v8 = vsel %vm858_vm0, %v2386_v13, 0  ;;  %vm857_vm4 = vcmp.ne.s16.totalorder %v855_v15, 0 }
  0xa4   : > { %869 = vrot.lane.b32.xlu1 %v861_v8, %s2275_s22  ;;  %v860_v17 = vsel %vm857_vm4, %v2382_v11, 0  ;;  %v966_v18 = vpop.permute.xlu0 %965 }
  0xa5   : > { %v2784_v21 = vpop.permute.xlu1 %906  ;;  %vm970_vm15 = vcmp.ne.s16.totalorder %v966_v18, 0 }
  0xa6   : > { %v908_v44 = vsel %vm854_vm2, %v905_v6, %v2784_v21  ;;  %v973_v49 = vsel %vm970_vm15, %v2382_v11, 0 }
  0xa7   : > { %653 = vrot.lane.b32.xlu0 %v646_v9, %s2277_s28  ;;  %vm910_vm0 = vcmp.ne.s16.totalorder %v908_v44, 0 }
  0xa8   : > { %918 = vrot.lane.b32.xlu1 %v912_v14, %s2275_s22  ;;  %v2780_v19 = vpop.permute.xlu0 %1017 }
  0xa9   : > { %v968_v23 = vpop.permute.xlu1 %967 }
  0xaa   : > { %v969_v30 = vsel %vm871_vm5, %v966_v18, %v968_v23  ;;  %vm972_vm1 = vcmp.ne.s16.totalorder %v968_v23, 0 }
  0xab   : > { %760 = vrot.lane.b32.xlu0 %v753_v16, %s2276_s27  ;;  %vm971_vm9 = vcmp.ne.s16.totalorder %v969_v30, 0  ;;  %v975_v52 = vsel %vm972_vm1, %v940_v50, 0 }
  0xac   : > { %v2782_v20 = vpop.permute.xlu0 %1070  ;;  %v974_v39 = vsel %vm971_vm9, %v2386_v13, 0  ;;  %vm911_vm9 = vcmp.ne.s16.totalorder %v2784_v21, 0 }
  0xad   : > { %v2796_v33 = vpop.permute.xlu1 %1019 }
  0xae   : > { %vm1024_vm4 = vcmp.ne.s16.totalorder %v2796_v33, 0  ;;  %v1021_v8 = vsel %vm871_vm5, %v2780_v19, %v2796_v33 }
  0xaf   : > { %867 = vrot.lane.b32.xlu0 %v860_v17, %s2275_s22  ;;  %v1027_v56 = vsel %vm1024_vm4, %v2835_v53, 0  ;;  %vm657_vm4 = vcmask 130048  }
  0xb0   : > { %v2786_v22 = vpop.permute.xlu0 %1122 }
  0xb1   : > { %v1073_v42 = vpop.permute.xlu1 %1072 }
  0xb4   : > { %v2791_v28 = vpop.permute.xlu0 %1175 }
  0xb5   : > { %v2826_v47 = vpop.permute.xlu1 %1124 }
  0xb8   : > { %v2808_v38 = vpop.permute.xlu0 %1280 }
  0xb9   : > { %v1178_v54 = vpop.permute.xlu1 %1177 }
  0xba   : > { %vm1182_vm15 = vcmp.ne.s16.totalorder %v1178_v54, 0  ;;  %v1179_v14 = vsel %vm657_vm4, %v2791_v28, %v1178_v54  ;;  %v2200_v54 = vld [vmem:[%s3250_s1 + $0x5] ss:$8 sm:$0x3] }
  0xbb   : > { %v1185_v4 = vsel %vm1182_vm15, %v940_v50, 0 }
  0xbc   : > { %v2821_v45 = vpop.permute.xlu0 %1227 }
  0xbd   : > { %v1283_v60 = vpop.permute.xlu1 %1282 }
  0xbe   : > { %vm1287_vm1 = vcmp.ne.s16.totalorder %v1283_v60, 0 }
  0xbf   : > { %v1290_v7 = vsel %vm1287_vm1, %v940_v50, 0 }
  0xc0   : > { %v2832_v51 = vpop.permute.xlu0 %1332 }
  0xc1   : > { %v1230_v1 = vpop.permute.xlu1 %1229 }
  0xc2   : > { %vm1234_vm1 = vcmp.ne.s16.totalorder %v1230_v1, 0 }
  0xc3   : > { %v1237_v33 = vsel %vm1234_vm1, %v2835_v53, 0 }
  0xc5   : > { %v1335_v9 = vpop.permute.xlu1 %1334 }
  0xea   : > { %v490_v24 = vpop.f32.mrb[0].mxu0 }
  0xeb   : > { %v492_v25 = vpop.f32.mrb[1].mxu0 }
  0xec   : > { %v494_v29 = vpop.f32.mrb[2].mxu0 }
  0xed   : > { %v2794_v31 = vpack.c.bf16 %v494_v29, %v490_v24  ;;  %v496_v32 = vpop.f32.mrb[3].mxu0 }
  0xee   : > { %v2798_v34 = vpack.c.bf16 %v496_v32, %v492_v25 }
  0xef   : > { %v592_v35 = vsel %vm589_vm6, %v2794_v31, 0  ;;  %v699_v40 = vsel %vm696_vm10, %v2794_v31, 0  ;;  %v806_v43 = vsel %vm803_vm12, %v2794_v31, 0  ;;  %v913_v48 = vsel %vm910_vm0, %v2794_v31, 0 }
  0xf0   : > { %599 = vrot.lane.b32.xlu1 %v592_v35, %s2278_s30  ;;  %v593_v37 = vsel %vm590_vm7, %v2798_v34, 0  ;;  %v700_v46 = vsel %vm697_vm13, %v2798_v34, 0  ;;  %v807_v55 = vsel %vm804_vm3, %v2798_v34, 0  ;;  %vm1022_vm6 = vcmp.ne.s16.totalorder %v2780_v19, 0 }
  0xf1   : > { %601 = vrot.lane.b32.xlu0 %v593_v37, %s2278_s30  ;;  %vm1077_vm7 = vcmp.ne.s16.totalorder %v1073_v42, 0  ;;  %v1025_v58 = vsel %vm1022_vm6, %v2794_v31, 0  ;;  %vm764_vm10 = vcmask 121856   ;;  %v914_v62 = vsel %vm911_vm9, %v2798_v34, 0 }
  0xf2   : > { %v1080_v59 = vsel %vm1077_vm7, %v940_v50, 0  ;;  %v1074_v61 = vsel %vm764_vm10, %v2782_v20, %v1073_v42  ;;  %vm1127_vm12 = vcmp.ne.s16.totalorder %v2786_v22, 0  ;;  %vm1075_vm0 = vcmp.ne.s16.totalorder %v2782_v20, 0  ;;  %v2197_v37 = vld [vmem:[%s3250_s1 + $0x1] ss:$8 sm:$0x3] }
  0xf3   : > { %vm1076_vm13 = vcmp.ne.s16.totalorder %v1074_v61, 0  ;;  %v1130_v0 = vsel %vm1127_vm12, %v2794_v31, 0  ;;  %v1078_v6 = vsel %vm1075_vm0, %v2382_v11, 0  ;;  %vm1129_vm3 = vcmp.ne.s16.totalorder %v2826_v47, 0 }
  0xf4   : > { %706 = vrot.lane.b32.xlu1 %v699_v40, %s2277_s28  ;;  %v1079_v2 = vsel %vm1076_vm13, %v2386_v13, 0  ;;  %v1132_v15 = vsel %vm1129_vm3, %v2835_v53, 0  ;;  %vm1023_vm6 = vcmp.ne.s16.totalorder %v1021_v8, 0  ;;  %vm550_vm7 = vcmask 138240  }
  0xf5   : > { %981 = vrot.lane.b32.xlu0 %v974_v39, %s2274_s16  ;;  %vm1181_vm9 = vcmp.ne.s16.totalorder %v1179_v14, 0  ;;  %vm1285_vm12 = vcmp.ne.s16.totalorder %v2808_v38, 0  ;;  %v1284_v17 = vsel %vm550_vm7, %v2808_v38, %v1283_v60  ;;  %v1026_v19 = vsel %vm1023_vm6, %v2798_v34, 0  ;;  %v2198_v39 = vld [vmem:[%s3250_s1 + $0x2] ss:$8 sm:$0x3] }
  0xf6   : > { %v1184_v20 = vsel %vm1181_vm9, %v2386_v13, 0  ;;  %v1126_v21 = vsel %vm764_vm10, %v2786_v22, %v2826_v47  ;;  %v1288_v24 = vsel %vm1285_vm12, %v2382_v11, 0  ;;  %vm1286_vm13 = vcmp.ne.s16.totalorder %v1284_v17, 0  ;;  %v1519_v60 = vld [vmem:[%s3255_s6] sm:$0xff] }
  0xf7   : > { %v1289_v29 = vsel %vm1286_vm13, %v2386_v13, 0  ;;  %vm1128_vm15 = vcmp.ne.s16.totalorder %v1126_v21, 0  ;;  %vm1180_vm0 = vcmp.ne.s16.totalorder %v2791_v28, 0  ;;  %v1231_v22 = vsel %vm657_vm4, %v2821_v45, %v1230_v1  ;;  %v2257_v13 = vld [vmem:[%s3253_s4 + $0x4] ss:$12 sps:$4 sm:$0xff]  }
  0xf8   : > { %813 = vrot.lane.b32.xlu1 %v806_v43, %s2276_s27  ;;  %v1131_v30 = vsel %vm1128_vm15, %v2798_v34, 0  ;;  %v1183_v32 = vsel %vm1180_vm0, %v2382_v11, 0  ;;  %vm1233_vm3 = vcmp.ne.s16.totalorder %v1231_v22, 0  ;;  %vm1339_vm6 = vcmp.ne.s16.totalorder %v1335_v9, 0  ;;  %1449 = vmatprep.mubr.bf16.mxu1 %v2257_v13 }
  0xf9   : > { %708 = vrot.lane.b32.xlu0 %v700_v46, %s2277_s28  ;;  %v545_v57 = vpop.permute.xlu0 %544  ;;  %v1336_v28 = vsel %vm550_vm7, %v2832_v51, %v1335_v9  ;;  %v1236_v35 = vsel %vm1233_vm3, %v2798_v34, 0  ;;  %v1342_v11 = vsel %vm1339_vm6, %v2835_v53, 0  ;;  %vm1547_vm12 = vcmp.gt.f32.partialorder %v1546_v36, 0.0  ;;  %v2199_v46 = vld [vmem:[%s3250_s1 + $0x3] ss:$8 sm:$0x3] }
  0xfa   : > { %vm1338_vm9 = vcmp.ne.s16.totalorder %v1336_v28, 0  ;;  %vm1337_vm13 = vcmp.ne.s16.totalorder %v2832_v51, 0  ;;  %v1548_v38 = vsel %vm1547_vm12, 1, %v2270_v3  ;;  %vm1599_vm15 = vcmp.gt.f32.partialorder %v2197_v37, 0.0  ;;  %v1503_v53 = vld [vmem:[%s3254_s5] sm:$0xff] }
  0xfb   : > { %v1341_v40 = vsel %vm1338_vm9, %v2798_v34, 0  ;;  %v1552_v41 = vrot.slane %v1548_v38, %v2375_v10  ;;  %v1556_v42 = vrot.slane %v1548_v38, %v2384_v12  ;;  %v1600_v43 = vsel %vm1599_vm15, 1, %v2270_v3 }
  0xfc   : > { %920 = vrot.lane.b32.xlu1 %v913_v48, %s2275_s22  ;;  %vm1232_vm0 = vcmp.ne.s16.totalorder %v2821_v45, 0  ;;  %vm1651_vm1 = vcmp.gt.f32.partialorder %v2198_v39, 0.0  ;;  %v1340_v44 = vsel %vm1337_vm13, %v2794_v31, 0  ;;  %v1608_v50 = vrot.slane %v1600_v43, %v2384_v12 }
  0xfd   : > { %979 = vrot.lane.b32.xlu0 %v973_v49, %s2274_s16  ;;  %v549_v18 = vpop.permute.xlu1 %548  ;;  %vm2931_vm3 = vcmp.eq.s32.totalorder %v1552_v41, 1  ;;  %vm2935_vm6 = vcmp.eq.s32.totalorder %v1556_v42, 1  ;;  %v1604_v49 = vrot.slane %v1600_v43, %v2375_v10  ;;  %v1235_v45 = vsel %vm1232_vm0, %v2794_v31, 0 }
  0xfe   : > { %v1652_v51 = vsel %vm1651_vm1, 1, %v2270_v3  ;;  %vm1703_vm9 = vcmp.gt.f32.partialorder %v2199_v46, 0.0  ;;  %vm1559_vm12 = vmpackc.low %vm2935_vm6, %vm2931_vm3  ;;  %vm2962_vm15 = vcmp.eq.s32.totalorder %v1608_v50, 1  ;;  %vm1759_vm0 = vcmp.gt.f32.partialorder %v2200_v54, 0.0 }
  0xff   : > { %vm2958_vm13 = vcmp.eq.s32.totalorder %v1604_v49, 1  ;;  %v1560_v61 = vsel %vm1559_vm12, 65537, %v2270_v3  ;;  %v1760_v8 = vsel %vm1759_vm0, 1, %v2270_v3 }
 0x100   : > { %983 = vrot.lane.b32.xlu1 %v975_v52, %s2274_s16  ;;  %v1504_v52 = vld [vmem:[%s3254_s5 + $0x8] sm:$0xff]  ;;  %vm1611_vm1 = vmpackc.low %vm2962_vm15, %vm2958_vm13  ;;  %v1568_v9 = vrot.slane %v1560_v61, %v2414_v26 }
 0x101   : > { %815 = vrot.lane.b32.xlu0 %v807_v55, %s2276_s27  ;;  %v2852_v63 = vpop.permute.xlu0 %651  ;;  %v1612_v14 = vsel %vm1611_vm1, 65537, %v2270_v3 }
 0x102   : > { %v1616_v21 = vrot.slane %v1612_v14, %v2375_v10 }
 0x104   : > { %1031 = vrot.lane.b32.xlu1 %v1025_v58, %s2274_s16  ;;  %v1660_v58 = vrot.slane %v1652_v51, %v2384_v12 }
 0x105   : > { %1035 = vrot.lane.b32.xlu0 %v1027_v56, %s2274_s16 }
 0x106   : > { %vm2987_vm6 = vcmp.eq.s32.totalorder %v1660_v58, 1 }
 0x108   : > { %1088 = vrot.lane.b32.xlu1 %v1080_v59, %s2273_s29  ;;  %v1704_v59 = vsel %vm1703_vm9, 1, %v2270_v3 }
 0x109   : > { %922 = vrot.lane.b32.xlu0 %v914_v62, %s2275_s22  ;;  %v2860_v5 = vpop.permute.xlu0 %758  ;;  %v1520_v62 = vld [vmem:[%s3255_s6 + $0x8] sm:$0xff] }
 0x10c   : > { %1136 = vrot.lane.b32.xlu1 %v1130_v0, %s2273_s29  ;;  %v2201_v0 = vld [vmem:[%s3250_s1 + $0x6] ss:$8 sm:$0x3] }
 0x10d   : > { %1086 = vrot.lane.b32.xlu0 %v1079_v2, %s2273_s29  ;;  %vm1811_vm9 = vcmp.gt.f32.partialorder %v2201_v0, 0.0 }
 0x110   : > { %1193 = vrot.lane.b32.xlu1 %v1185_v4, %s2272_s23  ;;  %v1708_v4 = vrot.slane %v1704_v59, %v2375_v10 }
 0x111   : > { %1084 = vrot.lane.b32.xlu0 %v1078_v6, %s2273_s29  ;;  %v2873_v16 = vpop.permute.xlu0 %865  ;;  %v1712_v6 = vrot.slane %v1704_v59, %v2384_v12 }
 0x112   : > { %vm3004_vm13 = vcmp.eq.s32.totalorder %v1708_v4, 1 }
 0x113   : > { %vm3008_vm15 = vcmp.eq.s32.totalorder %v1712_v6, 1 }
 0x114   : > { %1298 = vrot.lane.b32.xlu1 %v1290_v7, %s2271_s18  ;;  %v1564_v7 = vrot.slane %v1560_v61, %v2375_v10  ;;  %vm1715_vm1 = vmpackc.low %vm3008_vm15, %vm3004_vm13 }
 0x115   : > { %1140 = vrot.lane.b32.xlu0 %v1132_v15, %s2273_s29  ;;  %v547_v23 = vpop.permute.xlu0 %546  ;;  %v2202_v15 = vld [vmem:[%s3250_s1 + $0x7] ss:$8 sm:$0x3] }
 0x116   : > { %v552_v25 = vsel %vm550_vm7, %v547_v23, %v549_v18  ;;  %v551_v27 = vsel %vm550_vm7, %v545_v57, %v547_v23  ;;  %v1656_v57 = vrot.slane %v1652_v51, %v2375_v10  ;;  %v1812_v23 = vsel %vm1811_vm9, 1, %v2270_v3 }
 0x117   : > { %1417 = vmatprep.subr.bf16.mxu1 %v552_v25  ;;  %vm1863_vm0 = vcmp.gt.f32.partialorder %v2202_v15, 0.0 }
 0x118   : > { %1033 = vrot.lane.b32.xlu1 %v1026_v19, %s2274_s16  ;;  %1418 = vmatpush1.bf16.msra.mxu1 %v551_v27  ;;  %vm2983_vm3 = vcmp.eq.s32.totalorder %v1656_v57, 1  ;;  %v1764_v19 = vrot.slane %v1760_v8, %v2375_v10  ;;  %v3020_v27 = vpop.permute.xlu1 %597  ;;  %v1864_v28 = vsel %vm1863_vm0, 1, %v2270_v3 }
 0x119   : > { %1191 = vrot.lane.b32.xlu0 %v1184_v20, %s2272_s23  ;;  %vm1663_vm12 = vmpackc.low %vm2987_vm6, %vm2983_vm3  ;;  %v1768_v20 = vrot.slane %v1760_v8, %v2384_v12  ;;  %v1868_v38 = vrot.slane %v1864_v28, %v2375_v10  ;;  %v1872_v39 = vrot.slane %v1864_v28, %v2384_v12 }
 0x11a   : > { %v1664_v25 = vsel %vm1663_vm12, 65537, %v2270_v3  ;;  %vm3029_vm3 = vcmp.eq.s32.totalorder %v1764_v19, 1 }
 0x11b   : > { %vm3033_vm6 = vcmp.eq.s32.totalorder %v1768_v20, 1  ;;  %v1668_v13 = vrot.slane %v1664_v25, %v2375_v10 }
 0x11c   : > { %1294 = vrot.lane.b32.xlu1 %v1288_v24, %s2271_s18  ;;  %v1620_v24 = vrot.slane %v1612_v14, %v2414_v26  ;;  %vm1771_vm12 = vmpackc.low %vm3033_vm6, %vm3029_vm3  ;;  %vm3073_vm3 = vcmp.eq.s32.totalorder %v1872_v39, 1 }
 0x11d   : > { %1296 = vrot.lane.b32.xlu0 %v1289_v29, %s2271_s18  ;;  %v2203_v29 = vld [vmem:[%s3250_s1 + $0x10] ss:$8 sm:$0x3] }
 0x11e   : > { %vm1915_vm9 = vcmp.gt.f32.partialorder %v2203_v29, 0.0 }
 0x11f   : > { %v1916_v42 = vsel %vm1915_vm9, 1, %v2270_v3 }
 0x120   : > { %1138 = vrot.lane.b32.xlu1 %v1131_v30, %s2273_s29  ;;  %v1920_v48 = vrot.slane %v1916_v42, %v2375_v10  ;;  %v1924_v49 = vrot.slane %v1916_v42, %v2384_v12 }
 0x121   : > { %1189 = vrot.lane.b32.xlu0 %v1183_v32, %s2272_s23  ;;  %v1816_v32 = vrot.slane %v1812_v23, %v2375_v10 }
 0x122   : > { %vm1925_vm9 = vcmp.eq.s32.totalorder %v1920_v48, 1 }
 0x123   : > { %vm3049_vm13 = vcmp.eq.s32.totalorder %v1816_v32, 1 }
 0x124   : > { %1245 = vrot.lane.b32.xlu1 %v1237_v33, %s2272_s23  ;;  %v1820_v33 = vrot.slane %v1812_v23, %v2384_v12 }
 0x125   : > { %1243 = vrot.lane.b32.xlu0 %v1236_v35, %s2272_s23  ;;  %v1672_v35 = vrot.slane %v1664_v25, %v2414_v26 }
 0x126   : > { %vm3053_vm15 = vcmp.eq.s32.totalorder %v1820_v33, 1 }
 0x127   : > { %vm1823_vm0 = vmpackc.low %vm3053_vm15, %vm3049_vm13  ;;  %vm1413_vm15 = vcmask 261120  }
 0x128   : > { %1350 = vrot.lane.b32.xlu1 %v1342_v11, %s2271_s18  ;;  %v1716_v11 = vsel %vm1715_vm1, 65537, %v2270_v3  ;;  %vm3069_vm1 = vcmp.eq.s32.totalorder %v1868_v38, 1  ;;  %v1824_v51 = vsel %vm1823_vm0, 65537, %v2270_v3  ;;  %v930_v38 = vld [vmem:[#allocation2 + $0x8] sm:$0xff] }
 0x129   : > { %1348 = vrot.lane.b32.xlu0 %v1341_v40, %s2271_s18  ;;  %v656_v40 = vpop.permute.xlu1 %655  ;;  %v1720_v41 = vrot.slane %v1716_v11, %v2375_v10  ;;  %v1724_v43 = vrot.slane %v1716_v11, %v2414_v26  ;;  %vm1875_vm6 = vmpackc.low %vm3073_vm3, %vm3069_vm1  ;;  %v1828_v12 = vrot.slane %v1824_v51, %v2375_v10 }
 0x12a   : > { %v1876_v54 = vsel %vm1875_vm6, 65537, %v2270_v3 }
 0x12b   : > { %v1880_v56 = vrot.slane %v1876_v54, %v2375_v10  ;;  %v1884_v57 = vrot.slane %v1876_v54, %v2414_v26 }
 0x12c   : > { %1346 = vrot.lane.b32.xlu1 %v1340_v44, %s2271_s18  ;;  %v1772_v44 = vsel %vm1771_vm12, 65537, %v2270_v3  ;;  %vm1926_vm12 = vcmp.eq.s32.totalorder %v1924_v49, 1 }
 0x12d   : > { %1241 = vrot.lane.b32.xlu0 %v1235_v45, %s2272_s23  ;;  %v1776_v50 = vrot.slane %v1772_v44, %v2375_v10  ;;  %v1780_v45 = vrot.slane %v1772_v44, %v2414_v26  ;;  %vm1927_vm13 = vmpackc.low %vm1926_vm12, %vm1925_vm9 }
 0x12e   : > { %v1928_v58 = vsel %vm1927_vm13, 65537, %v2270_v3 }
 0x12f   : > { %v1932_v59 = vrot.slane %v1928_v58, %v2375_v10 }
 0x130   : > { %1512 = vperm.xlu1 %2238, %v1504_v52   ;;  %v705_v52 = vpop.permute.xlu1 %704 }
 0x131   : > { %1507 = vperm.xlu0 %2237, %v1503_v53   ;;  %v1832_v53 = vrot.slane %v1824_v51, %v2414_v26 }
 0x134   : > { %1523 = vperm.xlu1 %2238, %v1519_v60   ;;  %v763_v55 = vpop.permute.xlu1 %762  ;;  %v1936_v60 = vrot.slane %v1928_v58, %v2414_v26 }
 0x135   : > { %1528 = vperm.xlu0 %2237, %v1520_v62   ;;  %v654_v62 = vpop.permute.xlu0 %653 }
 0x136   : > { %v659_v26 = vsel %vm657_vm4, %v654_v62, %v656_v40  ;;  %v658_v14 = vsel %vm657_vm4, %v2852_v63, %v654_v62 }
 0x138   : > { %1569 = vrot.lane.b32.xlu1 %v1564_v7, %s2271_s18  ;;  %v812_v61 = vpop.permute.xlu1 %811 }
 0x139   : > { %1571 = vrot.lane.b32.xlu0 %v1568_v9, %s2271_s18  ;;  %v761_v1 = vpop.permute.xlu0 %760 }
 0x13c   : > { %1621 = vrot.lane.b32.xlu1 %v1616_v21, %s2272_s23  ;;  %v870_v0 = vpop.permute.xlu1 %869  ;;  %v766_v21 = vsel %vm764_vm10, %v761_v1, %v763_v55 }
 0x13d   : > { %1623 = vrot.lane.b32.xlu0 %v1620_v24, %s2272_s23  ;;  %v868_v4 = vpop.permute.xlu0 %867  ;;  %v765_v24 = vsel %vm764_vm10, %v2860_v5, %v761_v1 }
 0x13e   : > { %v873_v30 = vsel %vm871_vm5, %v868_v4, %v870_v0  ;;  %v872_v33 = vsel %vm871_vm5, %v2873_v16, %v868_v4  ;;  %v2258_v4 = vld [vmem:[%s3253_s4 + $0x8] ss:$12 sps:$4 sm:$0xff]  }
 0x140   : > { %1673 = vrot.lane.b32.xlu1 %v1668_v13, %s2273_s29  ;;  %v919_v2 = vpop.permute.xlu1 %918 }
 0x141   : > { %1675 = vrot.lane.b32.xlu0 %v1672_v35, %s2273_s29  ;;  %v931_v35 = vld [vmem:[#allocation2 + $0x10] sm:$0xff] }
 0x144   : > { %1725 = vrot.lane.b32.xlu1 %v1720_v41, %s2274_s16 }
 0x145   : > { %1727 = vrot.lane.b32.xlu0 %v1724_v43, %s2274_s16 }
 0x148   : > { %1781 = vrot.lane.b32.xlu1 %v1776_v50, %s2275_s22 }
 0x149   : > { %1783 = vrot.lane.b32.xlu0 %v1780_v45, %s2275_s22 }
 0x14c   : > { %1833 = vrot.lane.b32.xlu1 %v1828_v12, %s2276_s27 }
 0x14d   : > { %1835 = vrot.lane.b32.xlu0 %v1832_v53, %s2276_s27 }
 0x150   : > { %1885 = vrot.lane.b32.xlu1 %v1880_v56, %s2277_s28 }
 0x151   : > { %1887 = vrot.lane.b32.xlu0 %v1884_v57, %s2277_s28 }
 0x154   : > { %1937 = vrot.lane.b32.xlu1 %v1932_v59, %s2278_s30 }
 0x155   : > { %1939 = vrot.lane.b32.xlu0 %v1936_v60, %s2278_s30 }
 0x162   : > { %v600_v6 = vpop.permute.xlu1 %599 }
 0x163   : > { %v602_v3 = vpop.permute.xlu0 %601  ;;  %v603_v10 = vsel %vm550_vm7, %v3020_v27, %v600_v6 }
 0x164   : > { %v604_v7 = vsel %vm550_vm7, %v600_v6, %v602_v3  ;;  %v2255_v3 = vld [vmem:[%s3253_s4] ss:$12 sps:$4 sm:$0xff]  }
 0x165   : > { %1419 = vmatprep.subr.bf16.mxu1 %v604_v7 }
 0x166   : > { %v707_v8 = vpop.permute.xlu1 %706  ;;  %1420 = vmatpush1.bf16.msra.mxu1 %v603_v10 }
 0x167   : > { %1421 = vmatprep.subr.bf16.mxu1 %v659_v26  ;;  %v982_v9 = vpop.permute.xlu0 %981  ;;  %v710_v19 = vsel %vm657_vm4, %v705_v52, %v707_v8 }
 0x16a   : > { %v814_v15 = vpop.permute.xlu1 %813  ;;  %1422 = vmatpush1.bf16.msra.mxu1 %v658_v14 }
 0x16b   : > { %v709_v17 = vpop.permute.xlu0 %708  ;;  %v817_v29 = vsel %vm764_vm10, %v812_v61, %v814_v15 }
 0x16c   : > { %v711_v18 = vsel %vm657_vm4, %v707_v8, %v709_v17  ;;  %v3146_v8 = vld [vmem:[#allocation4] sm:$0xff] }
 0x16d   : > { %1423 = vmatprep.subr.bf16.mxu1 %v711_v18 }
 0x16e   : > { %v921_v20 = vpop.permute.xlu1 %920  ;;  %1424 = vmatpush1.bf16.msra.mxu1 %v710_v19 }
 0x16f   : > { %1425 = vmatprep.subr.bf16.mxu1 %v766_v21  ;;  %v980_v23 = vpop.permute.xlu0 %979  ;;  %v924_v11 = vsel %vm871_vm5, %v919_v2, %v921_v20 }
 0x170   : > { %v985_v43 = vsel %vm854_vm2, %v980_v23, %v982_v9 }
 0x172   : > { %v984_v25 = vpop.permute.xlu1 %983  ;;  %1426 = vmatpush1.bf16.msra.mxu1 %v765_v24 }
 0x173   : > { %v816_v63 = vpop.permute.xlu0 %815  ;;  %v986_v41 = vsel %vm854_vm2, %v982_v9, %v984_v25 }
 0x174   : > { %v818_v27 = vsel %vm764_vm10, %v814_v15, %v816_v63 }
 0x175   : > { %1427 = vmatprep.subr.bf16.mxu1 %v818_v27 }
 0x176   : > { %v1032_v22 = vpop.permute.xlu1 %1031  ;;  %1428 = vmatpush1.bf16.msra.mxu1 %v817_v29 }
 0x177   : > { %1429 = vmatprep.subr.bf16.mxu1 %v873_v30  ;;  %v1036_v32 = vpop.permute.xlu0 %1035 }
 0x17a   : > { %v1089_v13 = vpop.permute.xlu1 %1088  ;;  %1430 = vmatpush1.bf16.msra.mxu1 %v872_v33 }
 0x17b   : > { %v923_v5 = vpop.permute.xlu0 %922 }
 0x17c   : > { %v925_v28 = vsel %vm871_vm5, %v921_v20, %v923_v5 }
 0x17d   : > { %1431 = vmatprep.subr.bf16.mxu1 %v925_v28 }
 0x17e   : > { %v1137_v36 = vpop.permute.xlu1 %1136  ;;  %1432 = vmatpush1.bf16.msra.mxu1 %v924_v11 }
 0x17f   : > { %v1087_v37 = vpop.permute.xlu0 %1086  ;;  %1433 = vmatprep.subr.bf16.mxu1 %v931_v35 }
 0x182   : > { %v1194_v39 = vpop.permute.xlu1 %1193  ;;  %1434 = vmatpush1.bf16.msra.mxu1 %v930_v38 }
 0x183   : > { %1435 = vmatprep.subr.bf16.mxu1 %v2798_v34  ;;  %v1085_v40 = vpop.permute.xlu0 %1084  ;;  %v1091_v34 = vsel %vm747_vm14, %v1087_v37, %v1089_v13 }
 0x184   : > { %v1090_v51 = vsel %vm747_vm14, %v1085_v40, %v1087_v37 }
 0x186   : > { %v1299_v16 = vpop.permute.xlu1 %1298  ;;  %1436 = vmatpush1.bf16.msra.mxu1 %v2794_v31 }
 0x187   : > { %1437 = vmatprep.subr.bf16.mxu1 %v986_v41  ;;  %v1141_v42 = vpop.permute.xlu0 %1140 }
 0x18a   : > { %v1034_v44 = vpop.permute.xlu1 %1033  ;;  %1438 = vmatpush1.bf16.msra.mxu1 %v985_v43 }
 0x18b   : > { %v1192_v46 = vpop.permute.xlu0 %1191  ;;  %v1038_v47 = vsel %vm854_vm2, %v1034_v44, %v1036_v32  ;;  %v1037_v48 = vsel %vm854_vm2, %v1032_v22, %v1034_v44 }
 0x18c   : > { %1439 = vmatprep.subr.bf16.mxu1 %v1038_v47  ;;  %v1196_v56 = vsel %vm640_vm11, %v1192_v46, %v1194_v39 }
 0x18e   : > { %v1295_v49 = vpop.permute.xlu1 %1294  ;;  %1440 = vmatpush1.bf16.msra.mxu1 %v1037_v48 }
 0x18f   : > { %1441 = vmatprep.subr.bf16.mxu1 %v1091_v34  ;;  %v1297_v31 = vpop.permute.xlu0 %1296 }
 0x190   : > { %v1300_v50 = vsel %vm533_vm8, %v1295_v49, %v1297_v31  ;;  %v1301_v45 = vsel %vm533_vm8, %v1297_v31, %v1299_v16 }
 0x191   : > { %1460 = vmatprep.subr.bf16.mxu0 %v1301_v45 }
 0x192   : > { %v1139_v52 = vpop.permute.xlu1 %1138  ;;  %1442 = vmatpush1.bf16.msra.mxu1 %v1090_v51  ;;  %1461 = vmatpush1.bf16.msra.mxu0 %v1300_v50 }
 0x193   : > { %v1190_v12 = vpop.permute.xlu0 %1189  ;;  %v1143_v53 = vsel %vm747_vm14, %v1139_v52, %v1141_v42  ;;  %v1142_v54 = vsel %vm747_vm14, %v1137_v36, %v1139_v52 }
 0x194   : > { %1443 = vmatprep.subr.bf16.mxu1 %v1143_v53  ;;  %v1195_v58 = vsel %vm640_vm11, %v1190_v12, %v1192_v46 }
 0x196   : > { %v1246_v55 = vpop.permute.xlu1 %1245  ;;  %1444 = vmatpush1.bf16.msra.mxu1 %v1142_v54 }
 0x197   : > { %1445 = vmatprep.subr.bf16.mxu1 %v1196_v56  ;;  %v1244_v57 = vpop.permute.xlu0 %1243 }
 0x198   : > { %v1248_v60 = vsel %vm640_vm11, %v1244_v57, %v1246_v55 }
 0x19a   : > { %v1351_v59 = vpop.permute.xlu1 %1350  ;;  %1446 = vmatpush1.bf16.msra.mxu1 %v1195_v58 }
 0x19b   : > { %1447 = vmatprep.subr.bf16.mxu1 %v1248_v60  ;;  %v1349_v61 = vpop.permute.xlu0 %1348 }
 0x19c   : > { %v1353_v62 = vsel %vm533_vm8, %v1349_v61, %v1351_v59 }
 0x19d   : > { %1462 = vmatprep.subr.bf16.mxu0 %v1353_v62  ;;  %v1757_v62 = vld [vmem:[#allocation4 + $0x18] sm:$0xff] }
 0x19e   : > { %v1347_v0 = vpop.permute.xlu1 %1346 }
 0x19f   : > { %v1352_v1 = vsel %vm533_vm8, %v1347_v0, %v1349_v61  ;;  %v1242_v2 = vpop.permute.xlu0 %1241 }
 0x1a0   : > { %1463 = vmatpush1.bf16.msra.mxu0 %v1352_v1  ;;  %v1247_v6 = vsel %vm640_vm11, %v1242_v2, %v1244_v57 }
 0x1a1   : > { %1448 = vmatpush1.bf16.msra.mxu1 %v1247_v6 }
 0x1a3   : > { %2196 = vmatmul.mubr.msk.bf16.vlgmr.msra.gmra.mrb[4].mxu0 %vm1413_vm15, %v2258_v4 }
 0x1a4   : > { %1450 = vmatmul.mubr.bf16.vlgmr.msra.gmra.mrb[0].mxu1 %v2255_v3 }
 0x1af   : > { %v1513_v7 = vpop.permute.xlu1 %1512 }
 0x1b0   : > { %v1508_v19 = vpop.permute.xlu0 %1507 }
 0x1b3   : > { %v1524_v10 = vpop.permute.xlu1 %1523 }
 0x1b4   : > { %v1529_v20 = vpop.permute.xlu0 %1528 }
 0x1b7   : > { %v1570_v26 = vpop.permute.xlu1 %1569 }
 0x1b8   : > { %vm1574_vm0 = vcmp.ne.s16.totalorder %v1570_v26, 0  ;;  %v1572_v21 = vpop.permute.xlu0 %1571 }
 0x1b9   : > { %v1577_v9 = vsel %vm1574_vm0, %v3146_v8, 0  ;;  %v1573_v47 = vsel %vm533_vm8, %v1570_v26, %v1572_v21  ;;  %vm1576_vm13 = vcmp.ne.s16.totalorder %v1572_v21, 0 }
 0x1ba   : > { %1583 = vrot.lane.b32.xlu1 %v1577_v9, %s2278_s30  ;;  %vm1575_vm6 = vcmp.ne.s16.totalorder %v1573_v47, 0 }
 0x1bb   : > { %v1622_v14 = vpop.permute.xlu1 %1621 }
 0x1bc   : > { %vm1626_vm1 = vcmp.ne.s16.totalorder %v1622_v14, 0  ;;  %v1624_v28 = vpop.permute.xlu0 %1623 }
 0x1bd   : > { %v1629_v15 = vsel %vm1626_vm1, %v3146_v8, 0  ;;  %v1625_v48 = vsel %vm640_vm11, %v1622_v14, %v1624_v28  ;;  %vm1628_vm0 = vcmp.ne.s16.totalorder %v1624_v28, 0 }
 0x1be   : > { %1635 = vrot.lane.b32.xlu0 %v1629_v15, %s2277_s28  ;;  %vm1627_vm9 = vcmp.ne.s16.totalorder %v1625_v48, 0 }
 0x1bf   : > { %v1674_v17 = vpop.permute.xlu1 %1673 }
 0x1c0   : > { %vm1678_vm3 = vcmp.ne.s16.totalorder %v1674_v17, 0  ;;  %v1676_v43 = vpop.permute.xlu0 %1675 }
 0x1c1   : > { %v1681_v18 = vsel %vm1678_vm3, %v3146_v8, 0  ;;  %v1677_v31 = vsel %vm747_vm14, %v1674_v17, %v1676_v43  ;;  %vm1680_vm1 = vcmp.ne.s16.totalorder %v1676_v43, 0 }
 0x1c2   : > { %1687 = vrot.lane.b32.xlu1 %v1681_v18, %s2276_s27  ;;  %vm1679_vm12 = vcmp.ne.s16.totalorder %v1677_v31, 0 }
 0x1c3   : > { %v1726_v51 = vpop.permute.xlu1 %1725 }
 0x1c4   : > { %v1728_v52 = vpop.permute.xlu0 %1727 }
 0x1c5   : > { %v1729_v12 = vsel %vm854_vm2, %v1726_v51, %v1728_v52 }
 0x1c6   : > { %vm1731_vm15 = vcmp.ne.s16.totalorder %v1729_v12, 0 }
 0x1c7   : > { %v1782_v56 = vpop.permute.xlu1 %1781 }
 0x1c8   : > { %v1784_v57 = vpop.permute.xlu0 %1783  ;;  %vm1786_vm3 = vcmp.ne.s16.totalorder %v1782_v56, 0 }
 0x1c9   : > { %v1785_v4 = vsel %vm871_vm5, %v1782_v56, %v1784_v57 }
 0x1cb   : > { %v1834_v0 = vpop.permute.xlu1 %1833 }
 0x1cc   : > { %v1836_v61 = vpop.permute.xlu0 %1835 }
 0x276   : > { %v1494_v23 = vpop.f32.mrb[4].mxu0 }
 0x277   : > { %v1451_v24 = vpop.f32.mrb[0].mxu1  ;;  %v1496_v25 = vpop.f32.mrb[5].mxu0 }
 0x278   : > { %v1495_v63 = vadd.f32 %v1494_v23, %v1451_v24  ;;  %v1453_v27 = vpop.f32.mrb[1].mxu1  ;;  %v1498_v29 = vpop.f32.mrb[6].mxu0 }
 0x279   : > { %v1497_v22 = vadd.f32 %v1496_v25, %v1453_v27  ;;  %v1455_v30 = vpop.f32.mrb[2].mxu1  ;;  %v1500_v32 = vpop.f32.mrb[7].mxu0  ;;  %v2039_v27 = vld [vmem:[%s3257_s8] sm:$0xff] }
 0x27a   : > { %v1515_v33 = vmul.f32 %v1508_v19, %v1495_v63  ;;  %v1499_v13 = vadd.f32 %v1498_v29, %v1455_v30  ;;  %v1457_v5 = vpop.f32.mrb[3].mxu1  ;;  %v2040_v30 = vld [vmem:[%s3257_s8 + $0x8] sm:$0xff] }
 0x27b   : > { %v1516_v35 = vmul.f32 %v1508_v19, %v1497_v22  ;;  %v1501_v11 = vadd.f32 %v1500_v32, %v1457_v5  ;;  %v2055_v22 = vld [vmem:[%s3258_s9] sm:$0xff]  ;;  %v2056_v32 = vld [vmem:[%s3258_s9 + $0x8] sm:$0xff] }
 0x27c   : > { %v1531_v36 = vadd.f32 %v1524_v10, %v1515_v33  ;;  %v1517_v37 = vmul.f32 %v1513_v7, %v1499_v13 }
 0x27d   : > { %v1532_v38 = vadd.f32 %v1524_v10, %v1516_v35  ;;  %v1518_v39 = vmul.f32 %v1513_v7, %v1501_v11  ;;  %v1886_v7 = vpop.permute.xlu1 %1885  ;;  %v1888_v10 = vpop.permute.xlu0 %1887 }
 0x27e   : > { %v1533_v40 = vadd.f32 %v1529_v20, %v1517_v37  ;;  %v1535_v41 = vmax.f32 %v1531_v36, 0.0  ;;  %v1889_v14 = vsel %vm657_vm4, %v1886_v7, %v1888_v10 }
 0x27f   : > { %v1534_v16 = vadd.f32 %v1529_v20, %v1518_v39  ;;  %v1536_v44 = vmax.f32 %v1532_v38, 0.0  ;;  %v2259_v20 = vld [vmem:[%s3256_s7 + $0x4] ss:$8 sps:$4 sm:$0xff]  }
 0x280   : > { %v1537_v42 = vmax.f32 %v1533_v40, 0.0  ;;  %2206 = vmatprep.mubr.msk.bf16.mxu0 %vm657_vm4, %v2259_v20 }
 0x281   : > { %v1538_v46 = vmax.f32 %v1534_v16, 0.0  ;;  %v1938_v15 = vpop.permute.xlu1 %1937  ;;  %v1940_v17 = vpop.permute.xlu0 %1939 }
 0x282   : > { %v3156_v49 = vpack.c.bf16 %v1537_v42, %v1535_v41  ;;  %v1941_v23 = vsel %vm550_vm7, %v1938_v15, %v1940_v17 }
 0x283   : > { %v3158_v34 = vpack.c.bf16 %v1538_v46, %v1536_v44 }
 0x284   : > { %v1578_v50 = vsel %vm1575_vm6, %v3156_v49, 0  ;;  %v1630_v45 = vsel %vm1627_vm9, %v3156_v49, 0  ;;  %v1682_v54 = vsel %vm1679_vm12, %v3156_v49, 0  ;;  %v1734_v55 = vsel %vm1731_vm15, %v3156_v49, 0 }
 0x285   : > { %1585 = vrot.lane.b32.xlu1 %v1578_v50, %s2278_s30  ;;  %1637 = vrot.lane.b32.xlu0 %v1630_v45, %s2277_s28  ;;  %v1579_v53 = vsel %vm1576_vm13, %v3158_v34, 0  ;;  %v1631_v58 = vsel %vm1628_vm0, %v3158_v34, 0  ;;  %v1789_v59 = vsel %vm1786_vm3, %v3156_v49, 0  ;;  %v1683_v60 = vsel %vm1680_vm1, %v3158_v34, 0  ;;  %v1584_v33 = vpop.permute.xlu1 %1583  ;;  %v1636_v13 = vpop.permute.xlu0 %1635 }
 0x286   : > { %vm1730_vm6 = vcmp.ne.s16.totalorder %v1726_v51, 0  ;;  %vm1732_vm9 = vcmp.ne.s16.totalorder %v1728_v52, 0  ;;  %vm1788_vm12 = vcmp.ne.s16.totalorder %v1784_v57, 0  ;;  %vm1840_vm13 = vcmp.ne.s16.totalorder %v1836_v61, 0 }
 0x287   : > { %v1733_v1 = vsel %vm1730_vm6, %v3146_v8, 0  ;;  %v1735_v2 = vsel %vm1732_vm9, %v3158_v34, 0  ;;  %v1791_v6 = vsel %vm1788_vm12, %v1757_v62, 0  ;;  %v1843_v3 = vsel %vm1840_vm13, %v1757_v62, 0 }
 0x288   : > { %vm1787_vm15 = vcmp.ne.s16.totalorder %v1785_v4, 0  ;;  %vm1838_vm0 = vcmp.ne.s16.totalorder %v1834_v0, 0  ;;  %v1837_v8 = vsel %vm764_vm10, %v1834_v0, %v1836_v61  ;;  %vm1890_vm3 = vcmp.ne.s16.totalorder %v1886_v7, 0  ;;  %v2261_v4 = vld [vmem:[%s3256_s7] ss:$8 sps:$4 sm:$0xff]  }
 0x289   : > { %1587 = vrot.lane.b32.xlu0 %v1579_v53, %s2278_s30  ;;  %1689 = vrot.lane.b32.xlu1 %v1682_v54, %s2276_s27  ;;  %v1790_v26 = vsel %vm1787_vm15, %v3158_v34, 0  ;;  %v1841_v9 = vsel %vm1838_vm0, %v3156_v49, 0  ;;  %vm1839_vm1 = vcmp.ne.s16.totalorder %v1837_v8, 0  ;;  %vm1892_vm6 = vcmp.ne.s16.totalorder %v1888_v10, 0  ;;  %v1688_v5 = vpop.permute.xlu1 %1687 }
 0x28a   : > { %v1842_v18 = vsel %vm1839_vm1, %v3158_v34, 0  ;;  %v1893_v19 = vsel %vm1890_vm3, %v3156_v49, 0  ;;  %vm1891_vm9 = vcmp.ne.s16.totalorder %v1889_v14, 0  ;;  %v1895_v21 = vsel %vm1892_vm6, %v1757_v62, 0 }
 0x28b   : > { %vm1944_vm12 = vcmp.ne.s16.totalorder %v1940_v17, 0  ;;  %v1894_v24 = vsel %vm1891_vm9, %v3158_v34, 0  ;;  %vm1943_vm13 = vcmp.ne.s16.totalorder %v1941_v23, 0  ;;  %vm1942_vm15 = vcmp.ne.s16.totalorder %v1938_v15, 0 }
 0x28c   : > { %v1947_v25 = vsel %vm1944_vm12, %v1757_v62, 0  ;;  %v1946_v63 = vsel %vm1943_vm13, %v3158_v34, 0  ;;  %v1945_v29 = vsel %vm1942_vm15, %v3156_v49, 0 }
 0x28d   : > { %1639 = vrot.lane.b32.xlu1 %v1631_v58, %s2277_s28  ;;  %1741 = vrot.lane.b32.xlu0 %v1734_v55, %s2275_s22 }
 0x291   : > { %1795 = vrot.lane.b32.xlu1 %v1789_v59, %s2274_s16  ;;  %1691 = vrot.lane.b32.xlu0 %v1683_v60, %s2276_s27 }
 0x295   : > { %1743 = vrot.lane.b32.xlu1 %v1735_v2, %s2275_s22  ;;  %1739 = vrot.lane.b32.xlu0 %v1733_v1, %s2275_s22 }
 0x299   : > { %1799 = vrot.lane.b32.xlu0 %v1791_v6, %s2274_s16  ;;  %1851 = vrot.lane.b32.xlu1 %v1843_v3, %s2273_s29 }
 0x29d   : > { %1847 = vrot.lane.b32.xlu0 %v1841_v9, %s2273_s29  ;;  %1797 = vrot.lane.b32.xlu1 %v1790_v26, %s2274_s16 }
 0x2a1   : > { %1899 = vrot.lane.b32.xlu1 %v1893_v19, %s2272_s23  ;;  %1849 = vrot.lane.b32.xlu0 %v1842_v18, %s2273_s29 }
 0x2a5   : > { %1903 = vrot.lane.b32.xlu0 %v1895_v21, %s2272_s23  ;;  %1901 = vrot.lane.b32.xlu1 %v1894_v24, %s2272_s23 }
 0x2a9   : > { %1955 = vrot.lane.b32.xlu1 %v1947_v25, %s2271_s18  ;;  %1953 = vrot.lane.b32.xlu0 %v1946_v63, %s2271_s18 }
 0x2ad   : > { %2043 = vperm.xlu1 %2238, %v2039_v27   ;;  %1951 = vrot.lane.b32.xlu0 %v1945_v29, %s2271_s18 }
 0x2b1   : > { %2059 = vperm.xlu1 %2238, %v2055_v22   ;;  %2048 = vperm.xlu0 %2237, %v2040_v30  }
 0x2b5   : > { %2064 = vperm.xlu0 %2237, %v2056_v32  }
 0x2f7   : > { %v1586_v28 = vpop.permute.xlu1 %1585  ;;  %v1638_v35 = vpop.permute.xlu0 %1637 }
 0x2f8   : > { %v1589_v38 = vsel %vm550_vm7, %v1584_v33, %v1586_v28  ;;  %v1641_v41 = vsel %vm657_vm4, %v1636_v13, %v1638_v35 }
 0x2fb   : > { %v1690_v11 = vpop.permute.xlu1 %1689  ;;  %v1588_v36 = vpop.permute.xlu0 %1587 }
 0x2fc   : > { %v1590_v37 = vsel %vm550_vm7, %v1586_v28, %v1588_v36  ;;  %v1693_v46 = vsel %vm764_vm10, %v1688_v5, %v1690_v11 }
 0x2fd   : > { %1996 = vmatprep.subr.bf16.mxu0 %v1590_v37 }
 0x2fe   : > { %1997 = vmatpush1.bf16.msra.mxu0 %v1589_v38 }
 0x2ff   : > { %v1640_v39 = vpop.permute.xlu1 %1639  ;;  %v1742_v40 = vpop.permute.xlu0 %1741 }
 0x300   : > { %v1642_v16 = vsel %vm657_vm4, %v1638_v35, %v1640_v39 }
 0x301   : > { %1998 = vmatprep.subr.bf16.mxu0 %v1642_v16 }
 0x302   : > { %1999 = vmatpush1.bf16.msra.mxu0 %v1641_v41 }
 0x303   : > { %v1796_v42 = vpop.permute.xlu1 %1795  ;;  %v1692_v43 = vpop.permute.xlu0 %1691 }
 0x304   : > { %v1694_v44 = vsel %vm764_vm10, %v1690_v11, %v1692_v43 }
 0x305   : > { %2000 = vmatprep.subr.bf16.mxu0 %v1694_v44 }
 0x306   : > { %2001 = vmatpush1.bf16.msra.mxu0 %v1693_v46 }
 0x307   : > { %v1744_v47 = vpop.permute.xlu1 %1743  ;;  %v1740_v48 = vpop.permute.xlu0 %1739 }
 0x308   : > { %v1745_v31 = vsel %vm871_vm5, %v1740_v48, %v1742_v40  ;;  %v1746_v50 = vsel %vm871_vm5, %v1742_v40, %v1744_v47 }
 0x309   : > { %2002 = vmatprep.subr.bf16.mxu0 %v1746_v50 }
 0x30a   : > { %2003 = vmatpush1.bf16.msra.mxu0 %v1745_v31 }
 0x30b   : > { %v1852_v45 = vpop.permute.xlu1 %1851  ;;  %2004 = vmatprep.subr.bf16.mxu0 %v3158_v34  ;;  %v1800_v51 = vpop.permute.xlu0 %1799 }
 0x30e   : > { %2005 = vmatpush1.bf16.msra.mxu0 %v3156_v49 }
 0x30f   : > { %v1798_v52 = vpop.permute.xlu1 %1797  ;;  %v1848_v12 = vpop.permute.xlu0 %1847 }
 0x310   : > { %v1801_v53 = vsel %vm854_vm2, %v1796_v42, %v1798_v52  ;;  %v1802_v54 = vsel %vm854_vm2, %v1798_v52, %v1800_v51 }
 0x311   : > { %2006 = vmatprep.subr.bf16.mxu0 %v1802_v54 }
 0x312   : > { %2007 = vmatpush1.bf16.msra.mxu0 %v1801_v53 }
 0x313   : > { %v1900_v55 = vpop.permute.xlu1 %1899  ;;  %v1850_v56 = vpop.permute.xlu0 %1849 }
 0x314   : > { %v1853_v57 = vsel %vm747_vm14, %v1848_v12, %v1850_v56  ;;  %v1854_v58 = vsel %vm747_vm14, %v1850_v56, %v1852_v45 }
 0x315   : > { %2008 = vmatprep.subr.bf16.mxu0 %v1854_v58 }
 0x316   : > { %2009 = vmatpush1.bf16.msra.mxu0 %v1853_v57 }
 0x317   : > { %v1902_v34 = vpop.permute.xlu1 %1901  ;;  %v1904_v59 = vpop.permute.xlu0 %1903 }
 0x318   : > { %v1905_v49 = vsel %vm640_vm11, %v1900_v55, %v1902_v34  ;;  %v1906_v60 = vsel %vm640_vm11, %v1902_v34, %v1904_v59 }
 0x319   : > { %2010 = vmatprep.subr.bf16.mxu0 %v1906_v60 }
 0x31a   : > { %2011 = vmatpush1.bf16.msra.mxu0 %v1905_v49 }
 0x31b   : > { %v1956_v61 = vpop.permute.xlu1 %1955  ;;  %v1954_v62 = vpop.permute.xlu0 %1953 }
 0x31c   : > { %v1958_v0 = vsel %vm533_vm8, %v1954_v62, %v1956_v61 }
 0x31d   : > { %2012 = vmatprep.subr.bf16.mxu0 %v1958_v0 }
 0x31f   : > { %v1952_v1 = vpop.permute.xlu0 %1951 }
 0x320   : > { %v1957_v2 = vsel %vm533_vm8, %v1952_v1, %v1954_v62 }
 0x321   : > { %2013 = vmatpush1.bf16.msra.mxu0 %v1957_v2 }
 0x324   : > { %2029 = vmatmul.mubr.bf16.vlgmr.msra.gmra.mrb[8].mxu0 %v2261_v4 }
 0x32c   : > { %v2044_v6 = vpop.permute.xlu1 %2043 }
 0x330   : > { %v2049_v3 = vpop.permute.xlu0 %2048  ;;  %v2060_v26 = vpop.permute.xlu1 %2059 }
 0x334   : > { %v2065_v19 = vpop.permute.xlu0 %2064 }
 0x3f7   : > { %v2030_v7 = vpop.f32.mrb[8].mxu0 }
 0x3f8   : > { %v2051_v10 = vmul.f32 %v2044_v6, %v2030_v7  ;;  %v2032_v8 = vpop.f32.mrb[9].mxu0 }
 0x3f9   : > { %v2052_v9 = vmul.f32 %v2044_v6, %v2032_v8  ;;  %v2034_v14 = vpop.f32.mrb[10].mxu0 }
 0x3fa   : > { %v2067_v15 = vadd.f32 %v2060_v26, %v2051_v10  ;;  %v2053_v17 = vmul.f32 %v2049_v3, %v2034_v14  ;;  %v2036_v18 = vpop.f32.mrb[11].mxu0 }
 0x3fb   : > { %v2068_v20 = vadd.f32 %v2060_v26, %v2052_v9  ;;  %v2054_v21 = vmul.f32 %v2049_v3, %v2036_v18 }
 0x3fc   : > { %v2071_v23 = vmax.f32 %v2067_v15, 0.0  ;;  %v2069_v24 = vadd.f32 %v2065_v19, %v2053_v17 }
 0x3fd   : > { %v2072_v25 = vmax.f32 %v2068_v20, 0.0  ;;  %v2070_v63 = vadd.f32 %v2065_v19, %v2054_v21 }
 0x3fe   : > { %v2073_v27 = vmax.f32 %v2069_v24, 0.0 }
 0x3ff   : > { %v2214_v29 = vpack.c.bf16 %v2072_v25, %v2071_v23  ;;  %v2074_v22 = vmax.f32 %v2070_v63, 0.0 }
 0x401   : > { %2087 = vst [vmem:[%s379_s11] sm:$0xff] %v2214_v29  ;;  %v2215_v30 = vpack.c.bf16 %v2074_v22, %v2073_v27 }
 0x403   : > { %2088 = vst [vmem:[%s379_s11 + $0x8] sm:$0xff] %v2215_v30 }
 0x404 PF: > { %s20_s13 = sadd.s32 1, %s2268_s13  }
 0x405   : > { %p17_p4 = scmp.ge.s32.totalorder %s20_s13, 4  }
 0x407   :  { %19 = sbr.rel (!%p17_p4) target bundleno = 1 (0x1), region = 100 }

</bundles_post_ra>
